<compile_context>
chip_gen: v7x
topology: tpu7x:2x2x1
jax: 0.10.0
libtpu: 0.0.40
codegen_flags: <defaults>
</compile_context>

<pallas_src>
import math

import jax
import jax.numpy as jnp
import numpy as np
from jax.experimental import pallas as pl
from jax.experimental.pallas import tpu as pltpu

# ----------------------------------------------------------------------------
# Model hyper-parameters (structurally faithful to SDFValidityNet defaults)
# ----------------------------------------------------------------------------
D_IN = 3
D_OUT = 65          # 1 SDF value + 64-dim positional feature
D_HIDDEN = 64
N_LAYERS = 6
SKIP_IN = (4,)
BIAS_INIT = 0.5
SCALE = 1.0
INSIDE_OUTSIDE = False
MULTIRES = 0        # no positional embedding (embed_fn_fine is None)

IS_VALID_DIMS = [D_IN, 8, 32, 64, 128, 64, 32, 8, 1]

DIMS = [D_IN] + [D_HIDDEN] * N_LAYERS + [D_OUT]
NUM_LAYERS = len(DIMS)            # 8
N_SDF = NUM_LAYERS - 1            # 7 Linear layers in the SDF branch
N_VAL = len(IS_VALID_DIMS) - 1    # 8 Linear layers in the validity branch
SKIP_LAYER = SKIP_IN[0]

P = 128             # lanes per branch half
P2 = 2 * P          # packed activation width (SDF half | validity half)
D_PAD = 16          # narrow padded input width (positions in cols 0..2)


# ----------------------------------------------------------------------------
# Deterministic "logical" parameter init (mirrors geometric_init / default init)
# ----------------------------------------------------------------------------
def init_logical_params(seed=0):
    """Per-layer (W: (in, out), b: (out,)) f32 params mirroring the PyTorch init."""
    key = jax.random.PRNGKey(seed)

    sdf_layers = []
    for l in range(N_SDF):
        key, k = jax.random.split(key)
        in_dim = DIMS[l]
        out_dim = DIMS[l + 1] - DIMS[0] if (l + 1) in SKIP_IN else DIMS[l + 1]
        if l == NUM_LAYERS - 2:      # geometric init of the last SDF layer
            mean = math.sqrt(math.pi) / math.sqrt(DIMS[l])
            if INSIDE_OUTSIDE:
                mean = -mean
            W = mean + 1e-4 * np.asarray(
                jax.random.normal(k, (in_dim, out_dim), jnp.float32))
            b = (BIAS_INIT if INSIDE_OUTSIDE else -BIAS_INIT) * np.ones(
                (out_dim,), np.float32)
        else:
            std = math.sqrt(2.0) / math.sqrt(out_dim)
            W = std * np.asarray(
                jax.random.normal(k, (in_dim, out_dim), jnp.float32))
            b = np.zeros((out_dim,), np.float32)
        # TODO(synk): weight_norm reparameterization omitted; at init the
        # effective weight equals the raw weight, which is what we use here.
        sdf_layers.append((np.asarray(W, np.float32), b))

    val_layers = []
    for l in range(N_VAL):
        key, kw, kb = jax.random.split(key, 3)
        in_dim, out_dim = IS_VALID_DIMS[l], IS_VALID_DIMS[l + 1]
        bound = 1.0 / math.sqrt(in_dim)
        W = np.asarray(jax.random.uniform(kw, (in_dim, out_dim), jnp.float32,
                                          -bound, bound), np.float32)
        b = np.asarray(jax.random.uniform(kb, (out_dim,), jnp.float32,
                                          -bound, bound), np.float32)
        val_layers.append((W, b))

    return sdf_layers, val_layers


# ----------------------------------------------------------------------------
# Packing: logical f32 per-layer weights -> block-diagonal bf16 kernel weights
# ----------------------------------------------------------------------------
def pack_params(sdf_layers, val_layers, scale=SCALE):
    """Folds: position scale into first-layer/skip weights; cat(.)/sqrt(2) skip
    into (w_pack[SKIP-1], w_skip); output layout (sdf/scale -> lane0, features ->
    lanes 2..65, lane1 reserved for validity) into the last SDF layer's columns."""
    w_first = np.zeros((D_PAD, P2), np.float32)
    b_first = np.zeros((1, P2), np.float32)
    W, b = sdf_layers[0]
    w_first[:D_IN, :W.shape[1]] = scale * W
    b_first[0, :b.shape[0]] = b
    Wv, bv = val_layers[0]
    w_first[:D_IN, P:P + Wv.shape[1]] = scale * Wv
    b_first[0, P:P + bv.shape[0]] = bv

    w_pack = np.zeros((N_SDF - 1, P2, P2), np.float32)
    b_pack = np.zeros((N_SDF - 1, 1, P2), np.float32)
    w_skip = np.zeros((D_PAD, P2), np.float32)
    for l in range(1, N_SDF):
        i = l - 1
        W, b = sdf_layers[l]
        if l == SKIP_LAYER:
            # This layer sees cat([x, inputs], -1)/sqrt(2): split its weight.
            n_x = DIMS[l] - DIMS[0]                      # running-activation width
            w_pack[i, :n_x, :W.shape[1]] = W[:n_x] / math.sqrt(2.0)
            w_skip[:D_IN, :W.shape[1]] = scale * W[n_x:] / math.sqrt(2.0)
        else:
            w_pack[i, :W.shape[0], :W.shape[1]] = W
        b_pack[i, 0, :b.shape[0]] = b
        Wv, bv = val_layers[l]
        w_pack[i, P:P + Wv.shape[0], P:P + Wv.shape[1]] = Wv
        b_pack[i, 0, P:P + bv.shape[0]] = bv

    # Fold the output layout into the last SDF layer (packed step N_SDF-2):
    #   lane 0 -> sdf/scale, lane 1 -> reserved (zero), lanes 2..65 -> feature.
    i_last = N_SDF - 2
    Wl = w_pack[i_last]
    bl = b_pack[i_last]
    sdf_cols = Wl[:, :D_OUT].copy()
    sdf_bias = bl[0, :D_OUT].copy()
    Wl[:, :P] = 0.0
    bl[0, :P] = 0.0
    Wl[:, 0] = sdf_cols[:, 0] / scale
    bl[0, 0] = sdf_bias[0] / scale
    Wl[:, 2:2 + (D_OUT - 1)] = sdf_cols[:, 1:]
    bl[0, 2:2 + (D_OUT - 1)] = sdf_bias[1:]

    # Final validity layer (8 -> 1): place its single output in lane 1.
    w_vlast = np.zeros((P, P), np.float32)
    b_vlast = np.zeros((1, P), np.float32)
    Wv, bv = val_layers[N_VAL - 1]
    w_vlast[:Wv.shape[0], 1] = Wv[:, 0]
    b_vlast[0, 1] = bv[0]

    return (jnp.asarray(w_first, jnp.bfloat16), jnp.asarray(b_first, jnp.float32),
            jnp.asarray(w_pack, jnp.bfloat16), jnp.asarray(b_pack, jnp.float32),
            jnp.asarray(w_skip, jnp.bfloat16), jnp.asarray(w_vlast, jnp.bfloat16),
            jnp.asarray(b_vlast, jnp.float32))


# ----------------------------------------------------------------------------
# Pallas kernel
# ----------------------------------------------------------------------------
def _softplus_beta100(y):
    # torch.nn.Softplus(beta=100, threshold=20): (1/b)*log(1+exp(b*y)), linear
    # above the threshold to avoid overflow (matches PyTorch semantics).
    by = y * 100.0
    soft = jnp.log(1.0 + jnp.exp(jnp.minimum(by, 20.0))) * 0.01
    return jnp.where(by > 20.0, y, soft)


def _packed_act(y, *, sdf_linear):
    # SDF half: softplus(beta=100) (identity on the last SDF layer);
    # validity half: ReLU.  Both slices are 128-lane (vreg) aligned.
    y_sdf = y[:, :P]
    y_val = y[:, P:]
    if not sdf_linear:
        y_sdf = _softplus_beta100(y_sdf)
    return jnp.concatenate([y_sdf, jnp.maximum(y_val, 0.0)], axis=-1)


def sdf_validity_kernel(inp_ref, w_first_ref, b_first_ref, w_pack_ref,
                        b_pack_ref, w_skip_ref, w_vlast_ref, b_vlast_ref,
                        out_ref):
    inp = inp_ref[...].astype(jnp.bfloat16)                       # (TM, 16)

    # Step 0: SDF lin0 and validity lin0 together (SCALE folded into weights).
    h = jnp.dot(inp, w_first_ref[...], preferred_element_type=jnp.float32)
    h = _packed_act(h + b_first_ref[...], sdf_linear=False)

    # Steps 1..6: block-diagonal packed layers (SDF lin l | validity lin l).
    for i in range(N_SDF - 1):
        y = jnp.dot(h.astype(jnp.bfloat16), w_pack_ref[i],
                    preferred_element_type=jnp.float32)
        if i + 1 == SKIP_LAYER:
            # Skip connection: the running-activation part is folded into
            # w_pack; the (scaled) raw-input part is this tiny K=16 matmul.
            y = y + jnp.dot(inp, w_skip_ref[...],
                            preferred_element_type=jnp.float32)
        y = y + b_pack_ref[i]
        h = _packed_act(y, sdf_linear=(i == N_SDF - 2))

    # Final validity layer (8 -> 1): result lands in lane 1.  The SDF half of h
    # already holds the output layout (lane0=sdf/scale, lane1=0, 2..65=feature).
    logit = jnp.dot(h[:, P:].astype(jnp.bfloat16), w_vlast_ref[...],
                    preferred_element_type=jnp.float32) + b_vlast_ref[...]
    validity = pl.reciprocal(1.0 + jnp.exp(-logit), approx=True)  # sigmoid, EUP

    lane = jax.lax.broadcasted_iota(jnp.int32, out_ref.shape, 1)
    out_ref[...] = jnp.where(lane == 1, validity, h[:, :P])


# ----------------------------------------------------------------------------
# Wrapper
# ----------------------------------------------------------------------------
def _choose_tile_rows(n):
    # Large tiles amortize the ~0.35us/grid-step overhead; small batches still
    # get >=2 grid steps so both v7x TensorCores receive work.
    if n >= 1024:
        return 512
    half = (n + 1) // 2
    return max(8, ((half + 7) // 8) * 8)


@jax.jit
def sdf_validity_forward(inputs, w_first, b_first, w_pack, b_pack, w_skip,
                         w_vlast, b_vlast):
    n = inputs.shape[0] * inputs.shape[1]
    x = inputs.reshape(n, D_IN).astype(jnp.float32)
    tm = _choose_tile_rows(n)
    n_pad = ((n + tm - 1) // tm) * tm
    # Narrow padded input (positions in cols 0..2); SCALE is folded into the
    # first-layer / skip weights so no wrapper-wide multiply is needed.
    x_pad = jnp.zeros((n_pad, D_PAD), jnp.float32).at[:n, :D_IN].set(x)

    out = pl.pallas_call(
        sdf_validity_kernel,
        out_shape=jax.ShapeDtypeStruct((n_pad, P), jnp.float32),
        grid_spec=pltpu.PrefetchScalarGridSpec(
            num_scalar_prefetch=0,
            grid=(n_pad // tm,),
            in_specs=[
                pl.BlockSpec((tm, D_PAD), lambda i: (i, 0)),             # positions
                pl.BlockSpec((D_PAD, P2), lambda i: (0, 0)),             # step-0 W
                pl.BlockSpec((1, P2), lambda i: (0, 0)),                 # step-0 b
                pl.BlockSpec((N_SDF - 1, P2, P2), lambda i: (0, 0, 0)),  # packed W
                pl.BlockSpec((N_SDF - 1, 1, P2), lambda i: (0, 0, 0)),   # packed b
                pl.BlockSpec((D_PAD, P2), lambda i: (0, 0)),             # skip W
                pl.BlockSpec((P, P), lambda i: (0, 0)),                  # last val W
                pl.BlockSpec((1, P), lambda i: (0, 0)),                  # last val b
            ],
            out_specs=pl.BlockSpec((tm, P), lambda i: (i, 0)),
        ),
        compiler_params=pltpu.CompilerParams(
            dimension_semantics=("parallel",)),
    )(x_pad, w_first, b_first, w_pack, b_pack, w_skip, w_vlast, b_vlast)

    # (sdf/scale | validity | 64-d feature) already packed into lanes 0..65.
    return out[:n, :1 + 1 + (D_OUT - 1)]


# ----------------------------------------------------------------------------
# Pure NumPy/f32 reference mirroring SDFValidityNet.forward (correctness check)
# ----------------------------------------------------------------------------
def reference_forward(inputs, sdf_layers, val_layers):
    x0 = np.asarray(inputs, np.float32).reshape(-1, D_IN) * SCALE
    x = x0
    for l in range(N_SDF):
        W, b = sdf_layers[l]
        if l in SKIP_IN:
            x = np.concatenate([x, x0], axis=1) / math.sqrt(2.0)
        x = x @ W + b
        if l < N_SDF - 1:
            bx = 100.0 * x
            x = np.where(bx > 20.0, x,
                         np.log1p(np.exp(np.minimum(bx, 20.0))) / 100.0)
    v = x0
    for l in range(N_VAL):
        W, b = val_layers[l]
        v = v @ W + b
        if l < N_VAL - 1:
            v = np.maximum(v, 0.0)
    v = 1.0 / (1.0 + np.exp(-v))
    return np.concatenate([x[:, :1] / SCALE, v, x[:, 1:]], axis=1)


if __name__ == "__main__":
    sdf_layers, val_layers = init_logical_params(seed=0)
    params = pack_params(sdf_layers, val_layers)

    key = jax.random.PRNGKey(0)
    inputs = jax.random.normal(key, (2, 64, 3), dtype=jnp.float32)  # (B, Nsample, 3)

    out = jax.block_until_ready(sdf_validity_forward(inputs, *params))

    assert out.shape == (2 * 64, 1 + 1 + (D_OUT - 1)), out.shape
    out_np = np.asarray(out)
    assert np.all(np.isfinite(out_np))
    # validity column is a sigmoid output -> must lie in (0, 1)
    assert np.all((out_np[:, 1] > 0.0) & (out_np[:, 1] < 1.0))
    # bf16-matmul kernel vs f32 reference (generous tolerance for bf16 rounding)
    ref = reference_forward(np.asarray(inputs), sdf_layers, val_layers)
    np.testing.assert_allclose(out_np, ref, rtol=0.1, atol=0.1)
    print("KERNEL_OK")
</pallas_src>

<mosaic_0001>
module attributes {stable_mosaic.version = 11 : i64} {
  func.func @sdf_validity_kernel(%arg0: i32, %arg1: memref<64x16xf32, #tpu.memory_space<vmem>>, %arg2: memref<16x256xbf16, #tpu.memory_space<vmem>>, %arg3: memref<1x256xf32, #tpu.memory_space<vmem>>, %arg4: memref<6x256x256xbf16, #tpu.memory_space<vmem>>, %arg5: memref<6x1x256xf32, #tpu.memory_space<vmem>>, %arg6: memref<16x256xbf16, #tpu.memory_space<vmem>>, %arg7: memref<128x128xbf16, #tpu.memory_space<vmem>>, %arg8: memref<1x128xf32, #tpu.memory_space<vmem>>, %arg9: memref<64x128xf32, #tpu.memory_space<vmem>>) attributes {dimension_semantics = [#tpu.dimension_semantics<parallel>], iteration_bounds = array<i64: 2>, scalar_prefetch = 0 : i64, scratch_operands = 0 : i64, tpu.core_type = #tpu.core_type<tc>, window_params = [{transform_indices = @transform_0, window_bounds = array<i64: 64, 16>}, {pipeline_mode = #tpu.pipeline_mode<synchronous>, transform_indices = @transform_1, window_bounds = array<i64: 16, 256>}, {pipeline_mode = #tpu.pipeline_mode<synchronous>, transform_indices = @transform_2, window_bounds = array<i64: 1, 256>}, {pipeline_mode = #tpu.pipeline_mode<synchronous>, transform_indices = @transform_3, window_bounds = array<i64: 6, 256, 256>}, {pipeline_mode = #tpu.pipeline_mode<synchronous>, transform_indices = @transform_4, window_bounds = array<i64: 6, 1, 256>}, {pipeline_mode = #tpu.pipeline_mode<synchronous>, transform_indices = @transform_5, window_bounds = array<i64: 16, 256>}, {pipeline_mode = #tpu.pipeline_mode<synchronous>, transform_indices = @transform_6, window_bounds = array<i64: 128, 128>}, {pipeline_mode = #tpu.pipeline_mode<synchronous>, transform_indices = @transform_7, window_bounds = array<i64: 1, 128>}, {transform_indices = @transform_8, window_bounds = array<i64: 64, 128>}]} {
    %c0 = arith.constant 0 : index
    %c0_0 = arith.constant 0 : index
    %0 = vector.load %arg1[%c0, %c0_0] : memref<64x16xf32, #tpu.memory_space<vmem>>, vector<64x16xf32>
    %1 = arith.truncf %0 : vector<64x16xf32> to vector<64x16xbf16>
    %c0_1 = arith.constant 0 : index
    %c0_2 = arith.constant 0 : index
    %2 = vector.load %arg2[%c0_1, %c0_2] : memref<16x256xbf16, #tpu.memory_space<vmem>>, vector<16x256xbf16>
    %cst = arith.constant dense<0.000000e+00> : vector<64x256xf32>
    %3 = tpu.matmul %1, %2, %cst {dimension_numbers = #tpu.dot_dimension_numbers<[1], [0], [0], [1], [0, 0, 1, 1], [], []>} : vector<64x16xbf16>, vector<16x256xbf16>, vector<64x256xf32> -> vector<64x256xf32>
    %c0_3 = arith.constant 0 : index
    %c0_4 = arith.constant 0 : index
    %4 = vector.load %arg3[%c0_3, %c0_4] : memref<1x256xf32, #tpu.memory_space<vmem>>, vector<1x256xf32>
    %5 = vector.broadcast %4 : vector<1x256xf32> to vector<64x256xf32>
    %6 = arith.addf %3, %5 : vector<64x256xf32>
    %7 = vector.extract_strided_slice %6 {offsets = [0, 0], sizes = [64, 128], strides = [1, 1]} : vector<64x256xf32> to vector<64x128xf32>
    %8 = vector.extract_strided_slice %6 {offsets = [0, 128], sizes = [64, 128], strides = [1, 1]} : vector<64x256xf32> to vector<64x128xf32>
    %cst_5 = arith.constant 1.000000e+02 : f32
    %9 = vector.broadcast %cst_5 : f32 to vector<64x128xf32>
    %10 = arith.mulf %7, %9 : vector<64x128xf32>
    %cst_6 = arith.constant 2.000000e+01 : f32
    %11 = vector.broadcast %cst_6 : f32 to vector<64x128xf32>
    %12 = arith.minimumf %10, %11 : vector<64x128xf32>
    %13 = math.exp %12 : vector<64x128xf32>
    %cst_7 = arith.constant 1.000000e+00 : f32
    %14 = vector.broadcast %cst_7 : f32 to vector<64x128xf32>
    %15 = arith.addf %14, %13 : vector<64x128xf32>
    %16 = math.log %15 : vector<64x128xf32>
    %cst_8 = arith.constant 0.00999999977 : f32
    %17 = vector.broadcast %cst_8 : f32 to vector<64x128xf32>
    %18 = arith.mulf %16, %17 : vector<64x128xf32>
    %cst_9 = arith.constant 2.000000e+01 : f32
    %19 = vector.broadcast %cst_9 : f32 to vector<64x128xf32>
    %20 = arith.cmpf ogt, %10, %19 : vector<64x128xf32>
    %21 = arith.select %20, %7, %18 : vector<64x128xi1>, vector<64x128xf32>
    %cst_10 = arith.constant 0.000000e+00 : f32
    %22 = vector.broadcast %cst_10 : f32 to vector<64x128xf32>
    %23 = arith.maximumf %8, %22 : vector<64x128xf32>
    %24 = tpu.concatenate %21, %23 in 1 : vector<64x128xf32>, vector<64x128xf32> -> vector<64x256xf32>
    %25 = arith.truncf %24 : vector<64x256xf32> to vector<64x256xbf16>
    %c0_11 = arith.constant 0 : index
    %c0_12 = arith.constant 0 : index
    %c0_13 = arith.constant 0 : index
    %26 = vector.load %arg4[%c0_11, %c0_12, %c0_13] : memref<6x256x256xbf16, #tpu.memory_space<vmem>>, vector<1x256x256xbf16>
    %27 = vector.shape_cast %26 : vector<1x256x256xbf16> to vector<256x256xbf16>
    %cst_14 = arith.constant dense<0.000000e+00> : vector<64x256xf32>
    %28 = tpu.matmul %25, %27, %cst_14 {dimension_numbers = #tpu.dot_dimension_numbers<[1], [0], [0], [1], [0, 0, 1, 1], [], []>} : vector<64x256xbf16>, vector<256x256xbf16>, vector<64x256xf32> -> vector<64x256xf32>
    %c0_15 = arith.constant 0 : index
    %c0_16 = arith.constant 0 : index
    %c0_17 = arith.constant 0 : index
    %29 = vector.load %arg5[%c0_15, %c0_16, %c0_17] : memref<6x1x256xf32, #tpu.memory_space<vmem>>, vector<1x1x256xf32>
    %30 = vector.shape_cast %29 : vector<1x1x256xf32> to vector<1x256xf32>
    %31 = vector.broadcast %30 : vector<1x256xf32> to vector<64x256xf32>
    %32 = arith.addf %28, %31 : vector<64x256xf32>
    %33 = vector.extract_strided_slice %32 {offsets = [0, 0], sizes = [64, 128], strides = [1, 1]} : vector<64x256xf32> to vector<64x128xf32>
    %34 = vector.extract_strided_slice %32 {offsets = [0, 128], sizes = [64, 128], strides = [1, 1]} : vector<64x256xf32> to vector<64x128xf32>
    %cst_18 = arith.constant 1.000000e+02 : f32
    %35 = vector.broadcast %cst_18 : f32 to vector<64x128xf32>
    %36 = arith.mulf %33, %35 : vector<64x128xf32>
    %cst_19 = arith.constant 2.000000e+01 : f32
    %37 = vector.broadcast %cst_19 : f32 to vector<64x128xf32>
    %38 = arith.minimumf %36, %37 : vector<64x128xf32>
    %39 = math.exp %38 : vector<64x128xf32>
    %cst_20 = arith.constant 1.000000e+00 : f32
    %40 = vector.broadcast %cst_20 : f32 to vector<64x128xf32>
    %41 = arith.addf %40, %39 : vector<64x128xf32>
    %42 = math.log %41 : vector<64x128xf32>
    %cst_21 = arith.constant 0.00999999977 : f32
    %43 = vector.broadcast %cst_21 : f32 to vector<64x128xf32>
    %44 = arith.mulf %42, %43 : vector<64x128xf32>
    %cst_22 = arith.constant 2.000000e+01 : f32
    %45 = vector.broadcast %cst_22 : f32 to vector<64x128xf32>
    %46 = arith.cmpf ogt, %36, %45 : vector<64x128xf32>
    %47 = arith.select %46, %33, %44 : vector<64x128xi1>, vector<64x128xf32>
    %cst_23 = arith.constant 0.000000e+00 : f32
    %48 = vector.broadcast %cst_23 : f32 to vector<64x128xf32>
    %49 = arith.maximumf %34, %48 : vector<64x128xf32>
    %50 = tpu.concatenate %47, %49 in 1 : vector<64x128xf32>, vector<64x128xf32> -> vector<64x256xf32>
    %51 = arith.truncf %50 : vector<64x256xf32> to vector<64x256xbf16>
    %c1 = arith.constant 1 : index
    %c0_24 = arith.constant 0 : index
    %c0_25 = arith.constant 0 : index
    %52 = vector.load %arg4[%c1, %c0_24, %c0_25] : memref<6x256x256xbf16, #tpu.memory_space<vmem>>, vector<1x256x256xbf16>
    %53 = vector.shape_cast %52 : vector<1x256x256xbf16> to vector<256x256xbf16>
    %cst_26 = arith.constant dense<0.000000e+00> : vector<64x256xf32>
    %54 = tpu.matmul %51, %53, %cst_26 {dimension_numbers = #tpu.dot_dimension_numbers<[1], [0], [0], [1], [0, 0, 1, 1], [], []>} : vector<64x256xbf16>, vector<256x256xbf16>, vector<64x256xf32> -> vector<64x256xf32>
    %c1_27 = arith.constant 1 : index
    %c0_28 = arith.constant 0 : index
    %c0_29 = arith.constant 0 : index
    %55 = vector.load %arg5[%c1_27, %c0_28, %c0_29] : memref<6x1x256xf32, #tpu.memory_space<vmem>>, vector<1x1x256xf32>
    %56 = vector.shape_cast %55 : vector<1x1x256xf32> to vector<1x256xf32>
    %57 = vector.broadcast %56 : vector<1x256xf32> to vector<64x256xf32>
    %58 = arith.addf %54, %57 : vector<64x256xf32>
    %59 = vector.extract_strided_slice %58 {offsets = [0, 0], sizes = [64, 128], strides = [1, 1]} : vector<64x256xf32> to vector<64x128xf32>
    %60 = vector.extract_strided_slice %58 {offsets = [0, 128], sizes = [64, 128], strides = [1, 1]} : vector<64x256xf32> to vector<64x128xf32>
    %cst_30 = arith.constant 1.000000e+02 : f32
    %61 = vector.broadcast %cst_30 : f32 to vector<64x128xf32>
    %62 = arith.mulf %59, %61 : vector<64x128xf32>
    %cst_31 = arith.constant 2.000000e+01 : f32
    %63 = vector.broadcast %cst_31 : f32 to vector<64x128xf32>
    %64 = arith.minimumf %62, %63 : vector<64x128xf32>
    %65 = math.exp %64 : vector<64x128xf32>
    %cst_32 = arith.constant 1.000000e+00 : f32
    %66 = vector.broadcast %cst_32 : f32 to vector<64x128xf32>
    %67 = arith.addf %66, %65 : vector<64x128xf32>
    %68 = math.log %67 : vector<64x128xf32>
    %cst_33 = arith.constant 0.00999999977 : f32
    %69 = vector.broadcast %cst_33 : f32 to vector<64x128xf32>
    %70 = arith.mulf %68, %69 : vector<64x128xf32>
    %cst_34 = arith.constant 2.000000e+01 : f32
    %71 = vector.broadcast %cst_34 : f32 to vector<64x128xf32>
    %72 = arith.cmpf ogt, %62, %71 : vector<64x128xf32>
    %73 = arith.select %72, %59, %70 : vector<64x128xi1>, vector<64x128xf32>
    %cst_35 = arith.constant 0.000000e+00 : f32
    %74 = vector.broadcast %cst_35 : f32 to vector<64x128xf32>
    %75 = arith.maximumf %60, %74 : vector<64x128xf32>
    %76 = tpu.concatenate %73, %75 in 1 : vector<64x128xf32>, vector<64x128xf32> -> vector<64x256xf32>
    %77 = arith.truncf %76 : vector<64x256xf32> to vector<64x256xbf16>
    %c2 = arith.constant 2 : index
    %c0_36 = arith.constant 0 : index
    %c0_37 = arith.constant 0 : index
    %78 = vector.load %arg4[%c2, %c0_36, %c0_37] : memref<6x256x256xbf16, #tpu.memory_space<vmem>>, vector<1x256x256xbf16>
    %79 = vector.shape_cast %78 : vector<1x256x256xbf16> to vector<256x256xbf16>
    %cst_38 = arith.constant dense<0.000000e+00> : vector<64x256xf32>
    %80 = tpu.matmul %77, %79, %cst_38 {dimension_numbers = #tpu.dot_dimension_numbers<[1], [0], [0], [1], [0, 0, 1, 1], [], []>} : vector<64x256xbf16>, vector<256x256xbf16>, vector<64x256xf32> -> vector<64x256xf32>
    %c2_39 = arith.constant 2 : index
    %c0_40 = arith.constant 0 : index
    %c0_41 = arith.constant 0 : index
    %81 = vector.load %arg5[%c2_39, %c0_40, %c0_41] : memref<6x1x256xf32, #tpu.memory_space<vmem>>, vector<1x1x256xf32>
    %82 = vector.shape_cast %81 : vector<1x1x256xf32> to vector<1x256xf32>
    %83 = vector.broadcast %82 : vector<1x256xf32> to vector<64x256xf32>
    %84 = arith.addf %80, %83 : vector<64x256xf32>
    %85 = vector.extract_strided_slice %84 {offsets = [0, 0], sizes = [64, 128], strides = [1, 1]} : vector<64x256xf32> to vector<64x128xf32>
    %86 = vector.extract_strided_slice %84 {offsets = [0, 128], sizes = [64, 128], strides = [1, 1]} : vector<64x256xf32> to vector<64x128xf32>
    %cst_42 = arith.constant 1.000000e+02 : f32
    %87 = vector.broadcast %cst_42 : f32 to vector<64x128xf32>
    %88 = arith.mulf %85, %87 : vector<64x128xf32>
    %cst_43 = arith.constant 2.000000e+01 : f32
    %89 = vector.broadcast %cst_43 : f32 to vector<64x128xf32>
    %90 = arith.minimumf %88, %89 : vector<64x128xf32>
    %91 = math.exp %90 : vector<64x128xf32>
    %cst_44 = arith.constant 1.000000e+00 : f32
    %92 = vector.broadcast %cst_44 : f32 to vector<64x128xf32>
    %93 = arith.addf %92, %91 : vector<64x128xf32>
    %94 = math.log %93 : vector<64x128xf32>
    %cst_45 = arith.constant 0.00999999977 : f32
    %95 = vector.broadcast %cst_45 : f32 to vector<64x128xf32>
    %96 = arith.mulf %94, %95 : vector<64x128xf32>
    %cst_46 = arith.constant 2.000000e+01 : f32
    %97 = vector.broadcast %cst_46 : f32 to vector<64x128xf32>
    %98 = arith.cmpf ogt, %88, %97 : vector<64x128xf32>
    %99 = arith.select %98, %85, %96 : vector<64x128xi1>, vector<64x128xf32>
    %cst_47 = arith.constant 0.000000e+00 : f32
    %100 = vector.broadcast %cst_47 : f32 to vector<64x128xf32>
    %101 = arith.maximumf %86, %100 : vector<64x128xf32>
    %102 = tpu.concatenate %99, %101 in 1 : vector<64x128xf32>, vector<64x128xf32> -> vector<64x256xf32>
    %103 = arith.truncf %102 : vector<64x256xf32> to vector<64x256xbf16>
    %c3 = arith.constant 3 : index
    %c0_48 = arith.constant 0 : index
    %c0_49 = arith.constant 0 : index
    %104 = vector.load %arg4[%c3, %c0_48, %c0_49] : memref<6x256x256xbf16, #tpu.memory_space<vmem>>, vector<1x256x256xbf16>
    %105 = vector.shape_cast %104 : vector<1x256x256xbf16> to vector<256x256xbf16>
    %cst_50 = arith.constant dense<0.000000e+00> : vector<64x256xf32>
    %106 = tpu.matmul %103, %105, %cst_50 {dimension_numbers = #tpu.dot_dimension_numbers<[1], [0], [0], [1], [0, 0, 1, 1], [], []>} : vector<64x256xbf16>, vector<256x256xbf16>, vector<64x256xf32> -> vector<64x256xf32>
    %c0_51 = arith.constant 0 : index
    %c0_52 = arith.constant 0 : index
    %107 = vector.load %arg6[%c0_51, %c0_52] : memref<16x256xbf16, #tpu.memory_space<vmem>>, vector<16x256xbf16>
    %cst_53 = arith.constant dense<0.000000e+00> : vector<64x256xf32>
    %108 = tpu.matmul %1, %107, %cst_53 {dimension_numbers = #tpu.dot_dimension_numbers<[1], [0], [0], [1], [0, 0, 1, 1], [], []>} : vector<64x16xbf16>, vector<16x256xbf16>, vector<64x256xf32> -> vector<64x256xf32>
    %109 = arith.addf %106, %108 : vector<64x256xf32>
    %c3_54 = arith.constant 3 : index
    %c0_55 = arith.constant 0 : index
    %c0_56 = arith.constant 0 : index
    %110 = vector.load %arg5[%c3_54, %c0_55, %c0_56] : memref<6x1x256xf32, #tpu.memory_space<vmem>>, vector<1x1x256xf32>
    %111 = vector.shape_cast %110 : vector<1x1x256xf32> to vector<1x256xf32>
    %112 = vector.broadcast %111 : vector<1x256xf32> to vector<64x256xf32>
    %113 = arith.addf %109, %112 : vector<64x256xf32>
    %114 = vector.extract_strided_slice %113 {offsets = [0, 0], sizes = [64, 128], strides = [1, 1]} : vector<64x256xf32> to vector<64x128xf32>
    %115 = vector.extract_strided_slice %113 {offsets = [0, 128], sizes = [64, 128], strides = [1, 1]} : vector<64x256xf32> to vector<64x128xf32>
    %cst_57 = arith.constant 1.000000e+02 : f32
    %116 = vector.broadcast %cst_57 : f32 to vector<64x128xf32>
    %117 = arith.mulf %114, %116 : vector<64x128xf32>
    %cst_58 = arith.constant 2.000000e+01 : f32
    %118 = vector.broadcast %cst_58 : f32 to vector<64x128xf32>
    %119 = arith.minimumf %117, %118 : vector<64x128xf32>
    %120 = math.exp %119 : vector<64x128xf32>
    %cst_59 = arith.constant 1.000000e+00 : f32
    %121 = vector.broadcast %cst_59 : f32 to vector<64x128xf32>
    %122 = arith.addf %121, %120 : vector<64x128xf32>
    %123 = math.log %122 : vector<64x128xf32>
    %cst_60 = arith.constant 0.00999999977 : f32
    %124 = vector.broadcast %cst_60 : f32 to vector<64x128xf32>
    %125 = arith.mulf %123, %124 : vector<64x128xf32>
    %cst_61 = arith.constant 2.000000e+01 : f32
    %126 = vector.broadcast %cst_61 : f32 to vector<64x128xf32>
    %127 = arith.cmpf ogt, %117, %126 : vector<64x128xf32>
    %128 = arith.select %127, %114, %125 : vector<64x128xi1>, vector<64x128xf32>
    %cst_62 = arith.constant 0.000000e+00 : f32
    %129 = vector.broadcast %cst_62 : f32 to vector<64x128xf32>
    %130 = arith.maximumf %115, %129 : vector<64x128xf32>
    %131 = tpu.concatenate %128, %130 in 1 : vector<64x128xf32>, vector<64x128xf32> -> vector<64x256xf32>
    %132 = arith.truncf %131 : vector<64x256xf32> to vector<64x256xbf16>
    %c4 = arith.constant 4 : index
    %c0_63 = arith.constant 0 : index
    %c0_64 = arith.constant 0 : index
    %133 = vector.load %arg4[%c4, %c0_63, %c0_64] : memref<6x256x256xbf16, #tpu.memory_space<vmem>>, vector<1x256x256xbf16>
    %134 = vector.shape_cast %133 : vector<1x256x256xbf16> to vector<256x256xbf16>
    %cst_65 = arith.constant dense<0.000000e+00> : vector<64x256xf32>
    %135 = tpu.matmul %132, %134, %cst_65 {dimension_numbers = #tpu.dot_dimension_numbers<[1], [0], [0], [1], [0, 0, 1, 1], [], []>} : vector<64x256xbf16>, vector<256x256xbf16>, vector<64x256xf32> -> vector<64x256xf32>
    %c4_66 = arith.constant 4 : index
    %c0_67 = arith.constant 0 : index
    %c0_68 = arith.constant 0 : index
    %136 = vector.load %arg5[%c4_66, %c0_67, %c0_68] : memref<6x1x256xf32, #tpu.memory_space<vmem>>, vector<1x1x256xf32>
    %137 = vector.shape_cast %136 : vector<1x1x256xf32> to vector<1x256xf32>
    %138 = vector.broadcast %137 : vector<1x256xf32> to vector<64x256xf32>
    %139 = arith.addf %135, %138 : vector<64x256xf32>
    %140 = vector.extract_strided_slice %139 {offsets = [0, 0], sizes = [64, 128], strides = [1, 1]} : vector<64x256xf32> to vector<64x128xf32>
    %141 = vector.extract_strided_slice %139 {offsets = [0, 128], sizes = [64, 128], strides = [1, 1]} : vector<64x256xf32> to vector<64x128xf32>
    %cst_69 = arith.constant 1.000000e+02 : f32
    %142 = vector.broadcast %cst_69 : f32 to vector<64x128xf32>
    %143 = arith.mulf %140, %142 : vector<64x128xf32>
    %cst_70 = arith.constant 2.000000e+01 : f32
    %144 = vector.broadcast %cst_70 : f32 to vector<64x128xf32>
    %145 = arith.minimumf %143, %144 : vector<64x128xf32>
    %146 = math.exp %145 : vector<64x128xf32>
    %cst_71 = arith.constant 1.000000e+00 : f32
    %147 = vector.broadcast %cst_71 : f32 to vector<64x128xf32>
    %148 = arith.addf %147, %146 : vector<64x128xf32>
    %149 = math.log %148 : vector<64x128xf32>
    %cst_72 = arith.constant 0.00999999977 : f32
    %150 = vector.broadcast %cst_72 : f32 to vector<64x128xf32>
    %151 = arith.mulf %149, %150 : vector<64x128xf32>
    %cst_73 = arith.constant 2.000000e+01 : f32
    %152 = vector.broadcast %cst_73 : f32 to vector<64x128xf32>
    %153 = arith.cmpf ogt, %143, %152 : vector<64x128xf32>
    %154 = arith.select %153, %140, %151 : vector<64x128xi1>, vector<64x128xf32>
    %cst_74 = arith.constant 0.000000e+00 : f32
    %155 = vector.broadcast %cst_74 : f32 to vector<64x128xf32>
    %156 = arith.maximumf %141, %155 : vector<64x128xf32>
    %157 = tpu.concatenate %154, %156 in 1 : vector<64x128xf32>, vector<64x128xf32> -> vector<64x256xf32>
    %158 = arith.truncf %157 : vector<64x256xf32> to vector<64x256xbf16>
    %c5 = arith.constant 5 : index
    %c0_75 = arith.constant 0 : index
    %c0_76 = arith.constant 0 : index
    %159 = vector.load %arg4[%c5, %c0_75, %c0_76] : memref<6x256x256xbf16, #tpu.memory_space<vmem>>, vector<1x256x256xbf16>
    %160 = vector.shape_cast %159 : vector<1x256x256xbf16> to vector<256x256xbf16>
    %cst_77 = arith.constant dense<0.000000e+00> : vector<64x256xf32>
    %161 = tpu.matmul %158, %160, %cst_77 {dimension_numbers = #tpu.dot_dimension_numbers<[1], [0], [0], [1], [0, 0, 1, 1], [], []>} : vector<64x256xbf16>, vector<256x256xbf16>, vector<64x256xf32> -> vector<64x256xf32>
    %c5_78 = arith.constant 5 : index
    %c0_79 = arith.constant 0 : index
    %c0_80 = arith.constant 0 : index
    %162 = vector.load %arg5[%c5_78, %c0_79, %c0_80] : memref<6x1x256xf32, #tpu.memory_space<vmem>>, vector<1x1x256xf32>
    %163 = vector.shape_cast %162 : vector<1x1x256xf32> to vector<1x256xf32>
    %164 = vector.broadcast %163 : vector<1x256xf32> to vector<64x256xf32>
    %165 = arith.addf %161, %164 : vector<64x256xf32>
    %166 = vector.extract_strided_slice %165 {offsets = [0, 0], sizes = [64, 128], strides = [1, 1]} : vector<64x256xf32> to vector<64x128xf32>
    %167 = vector.extract_strided_slice %165 {offsets = [0, 128], sizes = [64, 128], strides = [1, 1]} : vector<64x256xf32> to vector<64x128xf32>
    %cst_81 = arith.constant 0.000000e+00 : f32
    %168 = vector.broadcast %cst_81 : f32 to vector<64x128xf32>
    %169 = arith.maximumf %167, %168 : vector<64x128xf32>
    %170 = tpu.concatenate %166, %169 in 1 : vector<64x128xf32>, vector<64x128xf32> -> vector<64x256xf32>
    %171 = vector.extract_strided_slice %170 {offsets = [0, 128], sizes = [64, 128], strides = [1, 1]} : vector<64x256xf32> to vector<64x128xf32>
    %172 = arith.truncf %171 : vector<64x128xf32> to vector<64x128xbf16>
    %c0_82 = arith.constant 0 : index
    %c0_83 = arith.constant 0 : index
    %173 = vector.load %arg7[%c0_82, %c0_83] : memref<128x128xbf16, #tpu.memory_space<vmem>>, vector<128x128xbf16>
    %cst_84 = arith.constant dense<0.000000e+00> : vector<64x128xf32>
    %174 = tpu.matmul %172, %173, %cst_84 {dimension_numbers = #tpu.dot_dimension_numbers<[1], [0], [0], [1], [0, 0, 1, 1], [], []>} : vector<64x128xbf16>, vector<128x128xbf16>, vector<64x128xf32> -> vector<64x128xf32>
    %c0_85 = arith.constant 0 : index
    %c0_86 = arith.constant 0 : index
    %175 = vector.load %arg8[%c0_85, %c0_86] : memref<1x128xf32, #tpu.memory_space<vmem>>, vector<1x128xf32>
    %176 = vector.broadcast %175 : vector<1x128xf32> to vector<64x128xf32>
    %177 = arith.addf %174, %176 : vector<64x128xf32>
    %cst_87 = arith.constant 0.000000e+00 : f32
    %178 = vector.broadcast %cst_87 : f32 to vector<64x128xf32>
    %179 = arith.subf %178, %177 : vector<64x128xf32>
    %180 = math.exp %179 : vector<64x128xf32>
    %cst_88 = arith.constant 1.000000e+00 : f32
    %181 = vector.broadcast %cst_88 : f32 to vector<64x128xf32>
    %182 = arith.addf %181, %180 : vector<64x128xf32>
    %183 = tpu.reciprocal %182 {approx = true} : vector<64x128xf32> -> vector<64x128xf32>
    %184 = tpu.iota {dimensions = array<i32: 1>} : vector<64x128xi32>
    %c1_i32 = arith.constant 1 : i32
    %185 = vector.broadcast %c1_i32 : i32 to vector<64x128xi32>
    %186 = arith.cmpi eq, %184, %185 : vector<64x128xi32>
    %187 = vector.extract_strided_slice %170 {offsets = [0, 0], sizes = [64, 128], strides = [1, 1]} : vector<64x256xf32> to vector<64x128xf32>
    %188 = arith.select %186, %183, %187 : vector<64x128xi1>, vector<64x128xf32>
    %c0_89 = arith.constant 0 : index
    %c0_90 = arith.constant 0 : index
    %189 = vector.load %arg9[%c0_89, %c0_90] : memref<64x128xf32, #tpu.memory_space<vmem>>, vector<64x128xf32>
    tpu.vector_store %arg9[%c0_89, %c0_90], %188 {strides = array<i32>} : memref<64x128xf32, #tpu.memory_space<vmem>>, vector<64x128xf32>,
    return
  }
  func.func @transform_0(%arg0: i32) -> (i32, i32) {
    %c0_i32 = arith.constant 0 : i32
    %c0_i32_0 = arith.constant 0 : i32
    return %arg0, %c0_i32 : i32, i32
  }
  func.func @transform_1(%arg0: i32) -> (i32, i32) {
    %c0_i32 = arith.constant 0 : i32
    %c0_i32_0 = arith.constant 0 : i32
    %c0_i32_1 = arith.constant 0 : i32
    return %c0_i32, %c0_i32_0 : i32, i32
  }
  func.func @transform_2(%arg0: i32) -> (i32, i32) {
    %c0_i32 = arith.constant 0 : i32
    %c0_i32_0 = arith.constant 0 : i32
    %c0_i32_1 = arith.constant 0 : i32
    return %c0_i32, %c0_i32_0 : i32, i32
  }
  func.func @transform_3(%arg0: i32) -> (i32, i32, i32) {
    %c0_i32 = arith.constant 0 : i32
    %c0_i32_0 = arith.constant 0 : i32
    %c0_i32_1 = arith.constant 0 : i32
    %c0_i32_2 = arith.constant 0 : i32
    return %c0_i32, %c0_i32_0, %c0_i32_1 : i32, i32, i32
  }
  func.func @transform_4(%arg0: i32) -> (i32, i32, i32) {
    %c0_i32 = arith.constant 0 : i32
    %c0_i32_0 = arith.constant 0 : i32
    %c0_i32_1 = arith.constant 0 : i32
    %c0_i32_2 = arith.constant 0 : i32
    return %c0_i32, %c0_i32_0, %c0_i32_1 : i32, i32, i32
  }
  func.func @transform_5(%arg0: i32) -> (i32, i32) {
    %c0_i32 = arith.constant 0 : i32
    %c0_i32_0 = arith.constant 0 : i32
    %c0_i32_1 = arith.constant 0 : i32
    return %c0_i32, %c0_i32_0 : i32, i32
  }
  func.func @transform_6(%arg0: i32) -> (i32, i32) {
    %c0_i32 = arith.constant 0 : i32
    %c0_i32_0 = arith.constant 0 : i32
    %c0_i32_1 = arith.constant 0 : i32
    return %c0_i32, %c0_i32_0 : i32, i32
  }
  func.func @transform_7(%arg0: i32) -> (i32, i32) {
    %c0_i32 = arith.constant 0 : i32
    %c0_i32_0 = arith.constant 0 : i32
    %c0_i32_1 = arith.constant 0 : i32
    return %c0_i32, %c0_i32_0 : i32, i32
  }
  func.func @transform_8(%arg0: i32) -> (i32, i32) {
    %c0_i32 = arith.constant 0 : i32
    %c0_i32_0 = arith.constant 0 : i32
    return %arg0, %c0_i32 : i32, i32
  }
}

</mosaic_0001>

<bundles_post_ra>
// kernel: sdf_validity_forward.1
= control target key start
LH: loop header
LB: loop body
LE: loop exit
PB: predicated region body
PF: predicated region fallthrough
CT: control target
= control target key end

     0   :  { %13 = vsyncpa [#allocation3], 0  ;;  %s3991_s27 = smov 0   ;;  %s4765_s0 = inlined_call_operand.vmem [shape: f32[128,16], index: 0, kind: input, shape index: {}]   ;;  %s4766_s1 = inlined_call_operand.vmem [shape: bf16[16,256], index: 1, kind: input, shape index: {}]   ;;  %s4767_s2 = inlined_call_operand.vmem [shape: f32[1,256], index: 2, kind: input, shape index: {}]   ;;  %s4768_s3 = inlined_call_operand.hbm [shape: bf16[6,256,256], index: 3, kind: input, shape index: {}]   ;;  %s4769_s4 = inlined_call_operand.vmem [shape: f32[6,1,256], index: 4, kind: input, shape index: {}]   ;;  %s4770_s5 = inlined_call_operand.vmem [shape: bf16[16,256], index: 5, kind: input, shape index: {}]   ;;  %s4771_s6 = inlined_call_operand.vmem [shape: bf16[128,128], index: 6, kind: input, shape index: {}]   ;;  %s4772_s7 = inlined_call_operand.vmem [shape: f32[1,128], index: 7, kind: input, shape index: {}]   ;;  %s4773_s8 = inlined_call_operand.vmem [shape: f32[128,128], index: 8, kind: output, shape index: {}]  }
   0x1 LB: > { %s3071_s28 = sadd.s32 4294967295, %s3940_s27   ;;  %p3073_p0 = scmp.ge.s32.totalorder %s3940_s27, 1  ;;  %s3940_s27 = sphi %s3991_s27, %s19_s27  }
   0x2   : > { %p223_p1 = scmp.lt.s32.totalorder %s3940_s27, 3  ;;  %s3942_s29 = smov [#allocation2]  }
   0x3   : > { %s241_s30 = sshll.u32 %s3942_s29, 4  ;;  %p4005_p3 = scmp.eq.s32.totalorder %s3071_s28, 0  ;;  %s242_s30 = int_to_ptr.vmem [resolvable:$true] %s241_s30 }
   0x4   : > { %p3999_p2 = pnand %p3073_p0, %p223_p1  ;;  %s3902_s14 = scalar_lea.hbm %s4768_s3, 24576 }
   0x5   : > { %s4778_s10 = scalar_select %p4005_p3, 1, 0 }
   0x6   : > { %s4777_s9 = scalar_select %p3999_p2, 1, 0 }
   0x7   : > { %p3358_p4 = pneg %p3999_p2  ;;  %p3903_p6 = scmp.ne.s32.totalorder %s4768_s3, %s3902_s14 }
   0x8   : > { %p3909_p10 = scmp.lt.u32.totalorder %s3902_s14, %s4768_s3 }
   0x9   : > { %p4013_p5 = pnand %p4005_p3, %p3358_p4 }
   0xb   : > { %p3904_p7 = pneg %p4013_p5 }
   0xd   : > { %p3905_p8 = pnand %p3904_p7, %p3903_p6 }
   0xf   : > { %p3906_p9 = pneg %p3905_p8 }
  0x11   : > { %p3911_p11 = pnand %p3909_p10, %p3906_p9 }
  0x13   : > { %3914 = shalt.err (!%p3911_p11)
}
  0x14   : > { %s3915_s19 = scalar_lea.vmem %s242_s30, 24576  ;;  %p3923_p1 = scmp.lt.s32.totalorder %s242_s30, %s242_s30 }
  0x15   : > { %p3916_p12 = scmp.ne.s32.totalorder %s242_s30, %s3915_s19  ;;  %p3924_p4 = scmp.lt.s32.totalorder %s3915_s19, %s3915_s19 }
  0x17   : > { %p3918_p13 = pnand %p3916_p12, %p3904_p7  ;;  %p3925_p3 = por %p3924_p4, %p3923_p1 }
  0x19   : > { %p3919_p0 = pneg %p3918_p13 }
  0x1b   : > { %p3926_p2 = pnand %p3925_p3, %p3919_p0 }
  0x1d   : > { %3929 = shalt.err (!%p3926_p2)
}
  0x1e   : > { %s3943_s20 = smov 128   ;;  %s3944_s21 = smov 8  }
  0x1f   : > { %3361 = dma.hbm_to_vmem [thread:$0]  (!%p4013_p5), %s4768_s3, 24576, %s242_s30, [#allocation3], %s3943_s20, %s3943_s20, %s3944_s21  }
  0x20   : > { %p4780_p6 = scmp.ne.s32.totalorder %s4777_s9, 0 }
  0x21   : > { %p4781_p8 = scmp.ne.s32.totalorder (!%p4780_p6), %s4778_s10, 0 }
  0x22   : > { %278 = sbr.rel (%p4780_p6) target bundleno = 2062 (0x80e), region = 52 }
  0x29   : > { %3935 = dma.done.wait (%p4781_p8), [#allocation3], 24576  }
  0x2a   : > { %3937 = vsyncadd (%p4781_p8), [#allocation3], 4294942720  ;;  %s3078_s24 = sshll.u32 %s3071_s28, 3  ;;  %v3945_v0 = vmov 0   ;;  %v3376_v1 = vld [vmem:[%s4766_s1 + $0x4] ss:$8 sps:$4 sm:$0xff]   ;;  %v341_v59 = vlaneseq }
  0x2b   : > { %406 = vmatprep.mubr.bf16.mxu1 %v3945_v0  ;;  %p313_p2 = scmp.lt.s32.totalorder %s3078_s24, 15  ;;  %v3378_v2 = vld [vmem:[%s4766_s1] ss:$8 sps:$4 sm:$0xff]   ;;  %374 = vmatprep.subr.bf16.mxu1 %v3376_v1  ;;  %vm361_vm0 = vcmask 130048   ;;  %v3381_v7 = vld [vmem:[#allocation2 + $0x4] ss:$8 sps:$4 sm:$0xff]  }
  0x2c   : > { %375 = vmatpush1.bf16.msra.mxu1 %v3378_v2  ;;  %v3379_v6 = vld [vmem:[#allocation2] ss:$8 sps:$4 sm:$0xff]   ;;  %v3384_v8 = vld [vmem:[#allocation2 + $0x14] ss:$8 sps:$4 sm:$0xff]   ;;  %v3382_v11 = vld [vmem:[#allocation2 + $0x10] ss:$8 sps:$4 sm:$0xff]  }
  0x2d   : > { %s4783_s24 = smov (!%p313_p2, %s3078_s24), 15  ;;  %747 = vmatprep.subr.bf16.mxu1 %v3381_v7  ;;  %v3387_v12 = vld [vmem:[#allocation2 + $0x24] ss:$8 sps:$4 sm:$0xff]   ;;  %v3385_v14 = vld [vmem:[#allocation2 + $0x20] ss:$8 sps:$4 sm:$0xff]   ;;  %v342_v60 = vshrl.u32 %v341_v59, 7 }
  0x2e   : > { %s3079_s25 = sshll.u32 %s4783_s24, 3  ;;  %v3390_v15 = vld [vmem:[#allocation2 + $0x34] ss:$8 sps:$4 sm:$0xff]   ;;  %v3388_v18 = vld [vmem:[#allocation2 + $0x30] ss:$8 sps:$4 sm:$0xff]  }
  0x2f   : > { %s4050_s30 = scalar_lea.vmem %s4765_s0, %s3079_s25  ;;  %v3393_v19 = vld [vmem:[#allocation2 + $0x44] ss:$8 sps:$4 sm:$0xff]   ;;  %v3391_v21 = vld [vmem:[#allocation2 + $0x40] ss:$8 sps:$4 sm:$0xff]   ;;  %v3396_v22 = vld [vmem:[#allocation2 + $0x54] ss:$8 sps:$4 sm:$0xff]   ;;  %s4736_s12 = scalar_lea.vmem %s4773_s8, %s3079_s25 }
  0x30   : > { %v325_v3 = vld [vmem:[%s4050_s30] sm:$0xff]  ;;  %v326_v4 = vld [vmem:[%s4050_s30 + $0x8] sm:$0xff]  ;;  %v327_v9 = vld [vmem:[%s4050_s30 + $0x10] sm:$0xff]  ;;  %v4086_v61 = vsub.s32 0, %v342_v60  ;;  %v4091_v63 = vsub.s32 1, %v342_v60 }
  0x31   : > { %v4060_v5 = vpack.c.bf16 %v326_v4, %v325_v3  ;;  %v328_v10 = vld [vmem:[%s4050_s30 + $0x18] sm:$0xff]  ;;  %v329_v16 = vld [vmem:[%s4050_s30 + $0x20] sm:$0xff]  ;;  %v330_v17 = vld [vmem:[%s4050_s30 + $0x28] sm:$0xff] }
  0x32   : > { %v4067_v13 = vpack.c.bf16 %v328_v10, %v327_v9  ;;  %v4074_v20 = vpack.c.bf16 %v330_v17, %v329_v16  ;;  %v331_v23 = vld [vmem:[%s4050_s30 + $0x30] sm:$0xff]  ;;  %v332_v24 = vld [vmem:[%s4050_s30 + $0x38] sm:$0xff]  ;;  %v3399_v27 = vld [vmem:[#allocation2 + $0x64] ss:$8 sps:$4 sm:$0xff]  }
  0x33   : > { %3084 = vmatmul.mubr.msk.bf16.vlgmr.msra.gmra.mrb[0].mxu1 %vm361_vm0, %v4060_v5  ;;  %v3394_v25 = vld [vmem:[#allocation2 + $0x50] ss:$8 sps:$4 sm:$0xff]   ;;  %v4081_v26 = vpack.c.bf16 %v332_v24, %v331_v23  ;;  %v3397_v28 = vld [vmem:[#allocation2 + $0x60] ss:$8 sps:$4 sm:$0xff]   ;;  %v3402_v29 = vld [vmem:[#allocation2 + $0x74] ss:$8 sps:$4 sm:$0xff]  }
  0x34   : > { %416 = vmatprep.mubr.bf16.mxu1 %v3945_v0  ;;  %748 = vmatpush1.bf16.msra.mxu1 %v3379_v6  ;;  %v3400_v30 = vld [vmem:[#allocation2 + $0x70] ss:$8 sps:$4 sm:$0xff]   ;;  %v3405_v31 = vld [vmem:[#allocation2 + $0x84] ss:$8 sps:$4 sm:$0xff]   ;;  %v3403_v32 = vld [vmem:[#allocation2 + $0x80] ss:$8 sps:$4 sm:$0xff]  }
  0x35   : > { %749 = vmatprep.subr.bf16.mxu1 %v3384_v8  ;;  %v3408_v33 = vld [vmem:[#allocation2 + $0x94] ss:$8 sps:$4 sm:$0xff]   ;;  %v3406_v34 = vld [vmem:[#allocation2 + $0x90] ss:$8 sps:$4 sm:$0xff]   ;;  %v3411_v35 = vld [vmem:[#allocation2 + $0xa4] ss:$8 sps:$4 sm:$0xff]  }
  0x36   : > { %v3409_v36 = vld [vmem:[#allocation2 + $0xa0] ss:$8 sps:$4 sm:$0xff]   ;;  %v3414_v37 = vld [vmem:[#allocation2 + $0xb4] ss:$8 sps:$4 sm:$0xff]   ;;  %v3412_v38 = vld [vmem:[#allocation2 + $0xb0] ss:$8 sps:$4 sm:$0xff]  }
  0x37   : > { %v3417_v39 = vld [vmem:[#allocation2 + $0xc4] ss:$8 sps:$4 sm:$0xff]   ;;  %v3415_v40 = vld [vmem:[#allocation2 + $0xc0] ss:$8 sps:$4 sm:$0xff]   ;;  %v3420_v41 = vld [vmem:[#allocation2 + $0xd4] ss:$8 sps:$4 sm:$0xff]  }
  0x38   : > { %750 = vmatpush1.bf16.msra.mxu1 %v3382_v11  ;;  %v3418_v42 = vld [vmem:[#allocation2 + $0xd0] ss:$8 sps:$4 sm:$0xff]   ;;  %v3423_v43 = vld [vmem:[#allocation2 + $0xe4] ss:$8 sps:$4 sm:$0xff]   ;;  %v3421_v44 = vld [vmem:[#allocation2 + $0xe0] ss:$8 sps:$4 sm:$0xff]  }
  0x39   : > { %751 = vmatprep.subr.bf16.mxu1 %v3387_v12  ;;  %v3426_v45 = vld [vmem:[#allocation2 + $0xf4] ss:$8 sps:$4 sm:$0xff]   ;;  %v3424_v46 = vld [vmem:[#allocation2 + $0xf0] ss:$8 sps:$4 sm:$0xff]   ;;  %v3427_v47 = vld [vmem:[#allocation2 + $0x104] ss:$8 sps:$4 sm:$0xff]  }
  0x3a   : > { %v3429_v48 = vld [vmem:[#allocation2 + $0x100] ss:$8 sps:$4 sm:$0xff]   ;;  %v3430_v49 = vld [vmem:[#allocation2 + $0x114] ss:$8 sps:$4 sm:$0xff]   ;;  %1122 = vmatprep.subr.bf16.mxu0 %v3427_v47  ;;  %v3432_v50 = vld [vmem:[#allocation2 + $0x110] ss:$8 sps:$4 sm:$0xff]  }
  0x3b   : > { %3085 = vmatmul.mubr.msk.bf16.gmra.mrb[4].mxu1 %vm361_vm0, %v4067_v13  ;;  %1123 = vmatpush1.bf16.msra.mxu0 %v3429_v48  ;;  %v3433_v51 = vld [vmem:[#allocation2 + $0x124] ss:$8 sps:$4 sm:$0xff]   ;;  %v3435_v52 = vld [vmem:[#allocation2 + $0x120] ss:$8 sps:$4 sm:$0xff]   ;;  %v3436_v53 = vld [vmem:[#allocation2 + $0x134] ss:$8 sps:$4 sm:$0xff]  }
  0x3c   : > { %426 = vmatprep.mubr.bf16.mxu1 %v3945_v0  ;;  %752 = vmatpush1.bf16.msra.mxu1 %v3385_v14  ;;  %v3438_v54 = vld [vmem:[#allocation2 + $0x130] ss:$8 sps:$4 sm:$0xff]   ;;  %v3439_v55 = vld [vmem:[#allocation2 + $0x144] ss:$8 sps:$4 sm:$0xff]   ;;  %v3441_v56 = vld [vmem:[#allocation2 + $0x140] ss:$8 sps:$4 sm:$0xff]  }
  0x3d   : > { %753 = vmatprep.subr.bf16.mxu1 %v3390_v15  ;;  %1124 = vmatprep.subr.bf16.mxu0 %v3430_v49  ;;  %v3442_v57 = vld [vmem:[#allocation2 + $0x154] ss:$8 sps:$4 sm:$0xff]   ;;  %v3444_v58 = vld [vmem:[#allocation2 + $0x150] ss:$8 sps:$4 sm:$0xff]   ;;  %v339_v62 = vld [vmem:[%s4767_s2] sm:$0x3] }
  0x3e   : > { %v4094_v1 = vrot.slane %v339_v62, %v4086_v61  ;;  %v4097_v2 = vrot.slane %v339_v62, %v4091_v63 }
  0x3f   : > { %1125 = vmatpush1.bf16.msra.mxu0 %v3432_v50 }
  0x40   : > { %754 = vmatpush1.bf16.msra.mxu1 %v3388_v18  ;;  %1126 = vmatprep.subr.bf16.mxu0 %v3433_v51 }
  0x41   : > { %755 = vmatprep.subr.bf16.mxu1 %v3393_v19 }
  0x43   : > { %3086 = vmatmul.mubr.msk.bf16.gmra.mrb[8].mxu1 %vm361_vm0, %v4074_v20  ;;  %1127 = vmatpush1.bf16.msra.mxu0 %v3435_v52 }
  0x44   : > { %436 = vmatprep.mubr.bf16.mxu1 %v3945_v0  ;;  %756 = vmatpush1.bf16.msra.mxu1 %v3391_v21 }
  0x45   : > { %757 = vmatprep.subr.bf16.mxu1 %v3396_v22  ;;  %1128 = vmatprep.subr.bf16.mxu0 %v3436_v53 }
  0x47   : > { %1129 = vmatpush1.bf16.msra.mxu0 %v3438_v54 }
  0x48   : > { %758 = vmatpush1.bf16.msra.mxu1 %v3394_v25  ;;  %1130 = vmatprep.subr.bf16.mxu0 %v3439_v55 }
  0x49   : > { %759 = vmatprep.subr.bf16.mxu1 %v3399_v27 }
  0x4b   : > { %3087 = vmatmul.mubr.msk.bf16.gmra.mrb[12].mxu1 %vm361_vm0, %v4081_v26  ;;  %1131 = vmatpush1.bf16.msra.mxu0 %v3441_v56 }
  0x4c   : > { %760 = vmatpush1.bf16.msra.mxu1 %v3397_v28  ;;  %1132 = vmatprep.subr.bf16.mxu0 %v3442_v57 }
  0x4d   : > { %761 = vmatprep.subr.bf16.mxu1 %v3402_v29 }
  0x4f   : > { %1133 = vmatpush1.bf16.msra.mxu0 %v3444_v58 }
  0x50   : > { %762 = vmatpush1.bf16.msra.mxu1 %v3400_v30 }
  0x51   : > { %763 = vmatprep.subr.bf16.mxu1 %v3405_v31 }
  0x54   : > { %764 = vmatpush1.bf16.msra.mxu1 %v3403_v32 }
  0x55   : > { %765 = vmatprep.subr.bf16.mxu1 %v3408_v33 }
  0x58   : > { %766 = vmatpush1.bf16.msra.mxu1 %v3406_v34 }
  0x59   : > { %767 = vmatprep.subr.bf16.mxu1 %v3411_v35 }
  0x5c   : > { %768 = vmatpush1.bf16.msra.mxu1 %v3409_v36 }
  0x5d   : > { %769 = vmatprep.subr.bf16.mxu1 %v3414_v37 }
  0x60   : > { %770 = vmatpush1.bf16.msra.mxu1 %v3412_v38 }
  0x61   : > { %771 = vmatprep.subr.bf16.mxu1 %v3417_v39 }
  0x64   : > { %772 = vmatpush1.bf16.msra.mxu1 %v3415_v40 }
  0x65   : > { %773 = vmatprep.subr.bf16.mxu1 %v3420_v41 }
  0x68   : > { %774 = vmatpush1.bf16.msra.mxu1 %v3418_v42 }
  0x69   : > { %775 = vmatprep.subr.bf16.mxu1 %v3423_v43 }
  0x6c   : > { %776 = vmatpush1.bf16.msra.mxu1 %v3421_v44 }
  0x6d   : > { %777 = vmatprep.subr.bf16.mxu1 %v3426_v45 }
  0x70   : > { %778 = vmatpush1.bf16.msra.mxu1 %v3424_v46 }
 0x106   : > { %v408_v3 = vpop.f32.mrb[0].mxu1 }
 0x107   : > { %v4100_v4 = vadd.f32 %v408_v3, %v4094_v1  ;;  %v410_v6 = vpop.f32.mrb[1].mxu1 }
 0x108   : > { %v411_v7 = vadd.f32 %v410_v6, %v4097_v2  ;;  %v412_v8 = vpop.f32.mrb[2].mxu1 }
 0x109   : > { %v4104_v9 = vmul.f32 100.0, %v4100_v4  ;;  %v4107_v10 = vadd.f32 %v412_v8, %v4094_v1  ;;  %v414_v11 = vpop.f32.mrb[3].mxu1 }
 0x10a   : > { %v415_v12 = vadd.f32 %v414_v11, %v4097_v2  ;;  %v527_v16 = vmax.f32 %v411_v7, 0.0 }
 0x10b   : > { %v455_v14 = vmin.f32 %v4104_v9, 20.0  ;;  %v4112_v15 = vmul.f32 100.0, %v4107_v10  ;;  %vm511_vm1 = vcmp.gt.f32.partialorder %v4104_v9, 20.0 }
 0x10c   : > { %v528_v17 = vmax.f32 %v415_v12, 0.0 }
 0x10d   : > { %v463_v18 = vmul.f32 1.442695, %v455_v14  ;;  %v456_v19 = vmin.f32 %v4112_v15, 20.0  ;;  %vm512_vm2 = vcmp.gt.f32.partialorder %v4112_v15, 20.0 }
 0x10e   : > { %v536_v21 = vpack.c.bf16 %v528_v17, %v527_v16  ;;  %v418_v22 = vpop.f32.mrb[4].mxu1 }
 0x10f   : > { %3678 = vpow2.f32 %v463_v18  ;;  %v465_v23 = vmul.f32 1.442695, %v456_v19  ;;  %v4116_v24 = vadd.f32 %v418_v22, %v4094_v1  ;;  %v420_v25 = vpop.f32.mrb[5].mxu1 }
 0x110   : > { %v421_v27 = vadd.f32 %v420_v25, %v4097_v2  ;;  %v422_v28 = vpop.f32.mrb[6].mxu1  ;;  %779 = vmatprep.mubr.bf16.mxu1 %v536_v21 }
 0x111   : > { %3680 = vpow2.f32 %v465_v23  ;;  %v4120_v29 = vmul.f32 100.0, %v4116_v24  ;;  %v4123_v30 = vadd.f32 %v422_v28, %v4094_v1  ;;  %v424_v31 = vpop.f32.mrb[7].mxu1 }
 0x112   : > { %v425_v32 = vadd.f32 %v424_v31, %v4097_v2  ;;  %v529_v35 = vmax.f32 %v421_v27, 0.0 }
 0x113   : > { %v457_v33 = vmin.f32 %v4120_v29, 20.0  ;;  %v4128_v34 = vmul.f32 100.0, %v4123_v30  ;;  %vm513_vm3 = vcmp.gt.f32.partialorder %v4120_v29, 20.0 }
 0x114   : > { %v530_v36 = vmax.f32 %v425_v32, 0.0 }
 0x115   : > { %v467_v37 = vmul.f32 1.442695, %v457_v33  ;;  %v458_v38 = vmin.f32 %v4128_v34, 20.0  ;;  %vm514_vm4 = vcmp.gt.f32.partialorder %v4128_v34, 20.0 }
 0x116   : > { %v4131_v39 = vpack.c.bf16 %v530_v36, %v529_v35  ;;  %v428_v40 = vpop.f32.mrb[8].mxu1 }
 0x117   : > { %3682 = vpow2.f32 %v467_v37  ;;  %v469_v41 = vmul.f32 1.442695, %v458_v38  ;;  %v4134_v42 = vadd.f32 %v428_v40, %v4094_v1  ;;  %v430_v43 = vpop.f32.mrb[9].mxu1 }
 0x118   : > { %v431_v44 = vadd.f32 %v430_v43, %v4097_v2  ;;  %v432_v45 = vpop.f32.mrb[10].mxu1 }
 0x119   : > { %v3679_v46 = vpop.eup %3678  ;;  %3684 = vpow2.f32 %v469_v41  ;;  %v4138_v47 = vmul.f32 100.0, %v4134_v42  ;;  %v4141_v48 = vadd.f32 %v432_v45, %v4094_v1  ;;  %v434_v49 = vpop.f32.mrb[11].mxu1 }
 0x11a   : > { %v479_v50 = vadd.f32 1.0, %v3679_v46  ;;  %v435_v51 = vadd.f32 %v434_v49, %v4097_v2  ;;  %v531_v56 = vmax.f32 %v431_v44, 0.0 }
 0x11b   : > { %v3681_v52 = vpop.eup %3680  ;;  %v459_v53 = vmin.f32 %v4138_v47, 20.0  ;;  %v4146_v54 = vmul.f32 100.0, %v4141_v48  ;;  %vm515_vm5 = vcmp.gt.f32.partialorder %v4138_v47, 20.0 }
 0x11c   : > { %3686 = vlog2.f32 %v479_v50  ;;  %v480_v55 = vadd.f32 1.0, %v3681_v52  ;;  %v532_v57 = vmax.f32 %v435_v51, 0.0 }
 0x11d   : > { %v471_v58 = vmul.f32 1.442695, %v459_v53  ;;  %v460_v60 = vmin.f32 %v4146_v54, 20.0  ;;  %vm516_vm6 = vcmp.gt.f32.partialorder %v4146_v54, 20.0 }
 0x11e   : > { %3688 = vlog2.f32 %v480_v55  ;;  %v4149_v62 = vpack.c.bf16 %v532_v57, %v531_v56  ;;  %v438_v3 = vpop.f32.mrb[12].mxu1 }
 0x11f   : > { %3690 = vpow2.f32 %v471_v58  ;;  %v473_v6 = vmul.f32 1.442695, %v460_v60  ;;  %v4152_v7 = vadd.f32 %v438_v3, %v4094_v1  ;;  %v440_v8 = vpop.f32.mrb[13].mxu1 }
 0x120   : > { %v441_v11 = vadd.f32 %v440_v8, %v4097_v2  ;;  %v442_v12 = vpop.f32.mrb[14].mxu1 }
 0x121   : > { %v3683_v14 = vpop.eup %3682  ;;  %3692 = vpow2.f32 %v473_v6  ;;  %v4156_v16 = vmul.f32 100.0, %v4152_v7  ;;  %v4159_v17 = vadd.f32 %v442_v12, %v4094_v1  ;;  %v444_v18 = vpop.f32.mrb[15].mxu1 }
 0x122   : > { %v481_v19 = vadd.f32 1.0, %v3683_v14  ;;  %v445_v21 = vadd.f32 %v444_v18, %v4097_v2  ;;  %v533_v28 = vmax.f32 %v441_v11, 0.0 }
 0x123   : > { %v3685_v22 = vpop.eup %3684  ;;  %v461_v23 = vmin.f32 %v4156_v16, 20.0  ;;  %v4164_v25 = vmul.f32 100.0, %v4159_v17  ;;  %vm517_vm7 = vcmp.gt.f32.partialorder %v4156_v16, 20.0  ;;  %v3454_v16 = vld [vmem:[#allocation2 + $0x194] ss:$8 sps:$4 sm:$0xff]  }
 0x124   : > { %3694 = vlog2.f32 %v481_v19  ;;  %v482_v27 = vadd.f32 1.0, %v3685_v22  ;;  %v534_v31 = vmax.f32 %v445_v21, 0.0 }
 0x125   : > { %v475_v32 = vmul.f32 1.442695, %v461_v23  ;;  %v462_v33 = vmin.f32 %v4164_v25, 20.0  ;;  %vm518_vm8 = vcmp.gt.f32.partialorder %v4164_v25, 20.0  ;;  %v3456_v25 = vld [vmem:[#allocation2 + $0x190] ss:$8 sps:$4 sm:$0xff]  }
 0x126   : > { %v3687_v35 = vpop.eup %3686  ;;  %3696 = vlog2.f32 %v482_v27  ;;  %v542_v1 = vpack.c.bf16 %v534_v31, %v533_v28  ;;  %v3447_v27 = vld [vmem:[#allocation2 + $0x160] ss:$8 sps:$4 sm:$0xff]   ;;  %v3448_v28 = vld [vmem:[#allocation2 + $0x174] ss:$8 sps:$4 sm:$0xff]   ;;  %v3450_v31 = vld [vmem:[#allocation2 + $0x170] ss:$8 sps:$4 sm:$0xff]  }
 0x127   : > { %v488_v36 = vmul.f32 0.6931472, %v3687_v35  ;;  %3698 = vpow2.f32 %v475_v32  ;;  %v477_v37 = vmul.f32 1.442695, %v462_v33  ;;  %v3451_v32 = vld [vmem:[#allocation2 + $0x184] ss:$8 sps:$4 sm:$0xff]  }
 0x128   : > { %v3689_v2 = vpop.eup %3688  ;;  %v3453_v33 = vld [vmem:[#allocation2 + $0x180] ss:$8 sps:$4 sm:$0xff]   ;;  %v3460_v35 = vld [vmem:[#allocation2 + $0x1b4] ss:$8 sps:$4 sm:$0xff]  }
 0x129   : > { %v3691_v38 = vpop.eup %3690  ;;  %v503_v40 = vmul.f32 0.01, %v488_v36  ;;  %v490_v41 = vmul.f32 0.6931472, %v3689_v2  ;;  %3700 = vpow2.f32 %v477_v37  ;;  %v3463_v36 = vld [vmem:[#allocation2 + $0x1c4] ss:$8 sps:$4 sm:$0xff]  }
 0x12a   : > { %v483_v43 = vadd.f32 1.0, %v3691_v38  ;;  %v3465_v37 = vld [vmem:[#allocation2 + $0x1c0] ss:$8 sps:$4 sm:$0xff]   ;;  %v3466_v2 = vld [vmem:[#allocation2 + $0x1d4] ss:$8 sps:$4 sm:$0xff]  }
 0x12b   : > { %v3693_v44 = vpop.eup %3692  ;;  %v504_v45 = vmul.f32 0.01, %v490_v41  ;;  %v519_v49 = vsel %vm511_vm1, %v4100_v4, %v503_v40  ;;  %v3468_v38 = vld [vmem:[#allocation2 + $0x1d0] ss:$8 sps:$4 sm:$0xff]   ;;  %v3469_v40 = vld [vmem:[#allocation2 + $0x1e4] ss:$8 sps:$4 sm:$0xff]  }
 0x12c   : > { %3702 = vlog2.f32 %v483_v43  ;;  %v484_v46 = vadd.f32 1.0, %v3693_v44  ;;  %v3471_v41 = vld [vmem:[#allocation2 + $0x1e0] ss:$8 sps:$4 sm:$0xff]   ;;  %v3472_v43 = vld [vmem:[#allocation2 + $0x1f4] ss:$8 sps:$4 sm:$0xff]  }
 0x12d   : > { %v520_v50 = vsel %vm512_vm2, %v4107_v10, %v504_v45  ;;  %v3474_v44 = vld [vmem:[#allocation2 + $0x1f0] ss:$8 sps:$4 sm:$0xff]   ;;  %v3475_v45 = vld [vmem:[#allocation2 + $0x200] ss:$8 sps:$4 sm:$0xff]  }
 0x12e   : > { %v3695_v51 = vpop.eup %3694  ;;  %v535_v52 = vpack.c.bf16 %v520_v50, %v519_v49  ;;  %3704 = vlog2.f32 %v484_v46  ;;  %v3477_v46 = vld [vmem:[#allocation2 + $0x204] ss:$8 sps:$4 sm:$0xff]   ;;  %v3480_v49 = vld [vmem:[#allocation2 + $0x214] ss:$8 sps:$4 sm:$0xff]   ;;  %v3478_v50 = vld [vmem:[#allocation2 + $0x210] ss:$8 sps:$4 sm:$0xff]  }
 0x12f   : > { %v492_v53 = vmul.f32 0.6931472, %v3695_v51  ;;  %1497 = vmatprep.subr.bf16.mxu1 %v3477_v46  ;;  %v3483_v51 = vld [vmem:[#allocation2 + $0x224] ss:$8 sps:$4 sm:$0xff]  }
 0x130   : > { %v3697_v55 = vpop.eup %3696  ;;  %780 = vmatmul.mubr.bf16.vlgmr.msra.gmra.mrb[16].mxu1 %v535_v52  ;;  %v3481_v52 = vld [vmem:[#allocation2 + $0x220] ss:$8 sps:$4 sm:$0xff]  }
 0x131   : > { %v3699_v56 = vpop.eup %3698  ;;  %789 = vmatprep.mubr.bf16.mxu1 %v4131_v39  ;;  %v494_v57 = vmul.f32 0.6931472, %v3697_v55  ;;  %v505_v58 = vmul.f32 0.01, %v492_v53  ;;  %1498 = vmatpush1.bf16.msra.mxu1 %v3475_v45  ;;  %v3486_v53 = vld [vmem:[#allocation2 + $0x234] ss:$8 sps:$4 sm:$0xff]  }
 0x132   : > { %v485_v9 = vadd.f32 1.0, %v3699_v56  ;;  %1499 = vmatprep.subr.bf16.mxu1 %v3480_v49  ;;  %v3484_v55 = vld [vmem:[#allocation2 + $0x230] ss:$8 sps:$4 sm:$0xff]   ;;  %v3489_v56 = vld [vmem:[#allocation2 + $0x244] ss:$8 sps:$4 sm:$0xff]  }
 0x133   : > { %v3701_v60 = vpop.eup %3700  ;;  %v506_v15 = vmul.f32 0.01, %v494_v57  ;;  %v521_v10 = vsel %vm513_vm3, %v4116_v24, %v505_v58  ;;  %v3487_v57 = vld [vmem:[#allocation2 + $0x240] ss:$8 sps:$4 sm:$0xff]   ;;  %v3492_v58 = vld [vmem:[#allocation2 + $0x254] ss:$8 sps:$4 sm:$0xff]  }
 0x134   : > { %3706 = vlog2.f32 %v485_v9  ;;  %v486_v4 = vadd.f32 1.0, %v3701_v60  ;;  %v3490_v9 = vld [vmem:[#allocation2 + $0x250] ss:$8 sps:$4 sm:$0xff]   ;;  %v575_v60 = vld [vmem:[%s4769_s4] sm:$0x3] }
 0x135   : > { %v522_v3 = vsel %vm514_vm4, %v4123_v30, %v506_v15  ;;  %1500 = vmatpush1.bf16.msra.mxu1 %v3478_v50  ;;  %v4189_v15 = vrot.slane %v575_v60, %v4086_v61 }
 0x136   : > { %v3703_v6 = vpop.eup %3702  ;;  %3708 = vlog2.f32 %v486_v4  ;;  %v537_v8 = vpack.c.bf16 %v522_v3, %v521_v10  ;;  %1501 = vmatprep.subr.bf16.mxu1 %v3483_v51  ;;  %v4192_v4 = vrot.slane %v575_v60, %v4091_v63 }
 0x137   : > { %v496_v11 = vmul.f32 0.6931472, %v3703_v6 }
 0x138   : > { %v3705_v39 = vpop.eup %3704  ;;  %790 = vmatmul.mubr.bf16.gmra.mrb[20].mxu1 %v537_v8 }
 0x139   : > { %799 = vmatprep.mubr.bf16.mxu1 %v4149_v62  ;;  %v498_v12 = vmul.f32 0.6931472, %v3705_v39  ;;  %v507_v14 = vmul.f32 0.01, %v496_v11  ;;  %1502 = vmatpush1.bf16.msra.mxu1 %v3481_v52 }
 0x13a   : > { %1503 = vmatprep.subr.bf16.mxu1 %v3486_v53 }
 0x13b   : > { %v508_v18 = vmul.f32 0.01, %v498_v12  ;;  %v523_v29 = vsel %vm515_vm5, %v4134_v42, %v507_v14 }
 0x13d   : > { %v524_v24 = vsel %vm516_vm6, %v4141_v48, %v508_v18  ;;  %v3445_v48 = vld [vmem:[#allocation2 + $0x164] ss:$8 sps:$4 sm:$0xff]   ;;  %1504 = vmatpush1.bf16.msra.mxu1 %v3484_v55 }
 0x13e   : > { %v3707_v30 = vpop.eup %3706  ;;  %v539_v34 = vpack.c.bf16 %v524_v24, %v523_v29  ;;  %1134 = vmatprep.subr.bf16.mxu0 %v3445_v48  ;;  %1505 = vmatprep.subr.bf16.mxu1 %v3489_v56 }
 0x13f   : > { %v500_v19 = vmul.f32 0.6931472, %v3707_v30  ;;  %1135 = vmatpush1.bf16.msra.mxu0 %v3447_v27 }
 0x140   : > { %v3709_v21 = vpop.eup %3708  ;;  %800 = vmatmul.mubr.bf16.gmra.mrb[24].mxu1 %v539_v34  ;;  %1136 = vmatprep.subr.bf16.mxu0 %v3448_v28 }
 0x141   : > { %809 = vmatprep.mubr.bf16.mxu1 %v542_v1  ;;  %v502_v22 = vmul.f32 0.6931472, %v3709_v21  ;;  %v509_v23 = vmul.f32 0.01, %v500_v19  ;;  %v3462_v1 = vld [vmem:[#allocation2 + $0x1b0] ss:$8 sps:$4 sm:$0xff]   ;;  %1506 = vmatpush1.bf16.msra.mxu1 %v3487_v57 }
 0x142   : > { %1507 = vmatprep.subr.bf16.mxu1 %v3492_v58 }
 0x143   : > { %v510_v62 = vmul.f32 0.01, %v502_v22  ;;  %v525_v47 = vsel %vm517_vm7, %v4152_v7, %v509_v23  ;;  %1137 = vmatpush1.bf16.msra.mxu0 %v3450_v31  ;;  %v3457_v7 = vld [vmem:[#allocation2 + $0x1a4] ss:$8 sps:$4 sm:$0xff]  }
 0x144   : > { %1138 = vmatprep.subr.bf16.mxu0 %v3451_v32 }
 0x145   : > { %v526_v54 = vsel %vm518_vm8, %v4159_v17, %v510_v62  ;;  %v3459_v17 = vld [vmem:[#allocation2 + $0x1a0] ss:$8 sps:$4 sm:$0xff]   ;;  %1508 = vmatpush1.bf16.msra.mxu1 %v3490_v9 }
 0x146   : > { %v541_v42 = vpack.c.bf16 %v526_v54, %v525_v47 }
 0x147   : > { %1139 = vmatpush1.bf16.msra.mxu0 %v3453_v33 }
 0x148   : > { %810 = vmatmul.mubr.bf16.gmra.mrb[28].mxu1 %v541_v42  ;;  %1140 = vmatprep.subr.bf16.mxu0 %v3454_v16 }
 0x14b   : > { %1141 = vmatpush1.bf16.msra.mxu0 %v3456_v25 }
 0x14c   : > { %1142 = vmatprep.subr.bf16.mxu0 %v3457_v7 }
 0x14f   : > { %1143 = vmatpush1.bf16.msra.mxu0 %v3459_v17 }
 0x150   : > { %1144 = vmatprep.subr.bf16.mxu0 %v3460_v35 }
 0x153   : > { %1145 = vmatpush1.bf16.msra.mxu0 %v3462_v1 }
 0x154   : > { %1146 = vmatprep.subr.bf16.mxu0 %v3463_v36 }
 0x157   : > { %1147 = vmatpush1.bf16.msra.mxu0 %v3465_v37 }
 0x158   : > { %1148 = vmatprep.subr.bf16.mxu0 %v3466_v2 }
 0x15b   : > { %1149 = vmatpush1.bf16.msra.mxu0 %v3468_v38 }
 0x15c   : > { %1150 = vmatprep.subr.bf16.mxu0 %v3469_v40 }
 0x15f   : > { %1151 = vmatpush1.bf16.msra.mxu0 %v3471_v41 }
 0x160   : > { %1152 = vmatprep.subr.bf16.mxu0 %v3472_v43 }
 0x163   : > { %1153 = vmatpush1.bf16.msra.mxu0 %v3474_v44 }
 0x203   : > { %v781_v10 = vpop.f32.mrb[16].mxu1 }
 0x204   : > { %v4195_v3 = vadd.f32 %v781_v10, %v4189_v15  ;;  %v783_v6 = vpop.f32.mrb[17].mxu1 }
 0x205   : > { %v784_v8 = vadd.f32 %v783_v6, %v4192_v4  ;;  %v785_v11 = vpop.f32.mrb[18].mxu1 }
 0x206   : > { %v4199_v39 = vmul.f32 100.0, %v4195_v3  ;;  %v4202_v12 = vadd.f32 %v785_v11, %v4189_v15  ;;  %v787_v14 = vpop.f32.mrb[19].mxu1 }
 0x207   : > { %v788_v18 = vadd.f32 %v787_v14, %v4192_v4  ;;  %v900_v30 = vmax.f32 %v784_v8, 0.0 }
 0x208   : > { %v828_v29 = vmin.f32 %v4199_v39, 20.0  ;;  %v4207_v24 = vmul.f32 100.0, %v4202_v12  ;;  %vm884_vm9 = vcmp.gt.f32.partialorder %v4199_v39, 20.0 }
 0x209   : > { %v901_v34 = vmax.f32 %v788_v18, 0.0 }
 0x20a   : > { %v836_v19 = vmul.f32 1.442695, %v828_v29  ;;  %v829_v21 = vmin.f32 %v4207_v24, 20.0  ;;  %vm885_vm10 = vcmp.gt.f32.partialorder %v4207_v24, 20.0 }
 0x20b   : > { %v791_v22 = vpop.f32.mrb[20].mxu1  ;;  %v909_v23 = vpack.c.bf16 %v901_v34, %v900_v30 }
 0x20c   : > { %3710 = vpow2.f32 %v836_v19  ;;  %v838_v62 = vmul.f32 1.442695, %v829_v21  ;;  %v4211_v47 = vadd.f32 %v791_v22, %v4189_v15  ;;  %v793_v54 = vpop.f32.mrb[21].mxu1 }
 0x20d   : > { %v794_v42 = vadd.f32 %v793_v54, %v4192_v4  ;;  %v795_v48 = vpop.f32.mrb[22].mxu1  ;;  %1154 = vmatprep.mubr.bf16.mxu0 %v909_v23 }
 0x20e   : > { %3712 = vpow2.f32 %v838_v62  ;;  %v4215_v27 = vmul.f32 100.0, %v4211_v47  ;;  %v4218_v28 = vadd.f32 %v795_v48, %v4189_v15  ;;  %v797_v31 = vpop.f32.mrb[23].mxu1 }
 0x20f   : > { %v798_v32 = vadd.f32 %v797_v31, %v4192_v4  ;;  %v902_v25 = vmax.f32 %v794_v42, 0.0 }
 0x210   : > { %v830_v33 = vmin.f32 %v4215_v27, 20.0  ;;  %v4223_v16 = vmul.f32 100.0, %v4218_v28  ;;  %vm886_vm11 = vcmp.gt.f32.partialorder %v4215_v27, 20.0 }
 0x211   : > { %v903_v7 = vmax.f32 %v798_v32, 0.0 }
 0x212   : > { %v840_v17 = vmul.f32 1.442695, %v830_v33  ;;  %v831_v35 = vmin.f32 %v4223_v16, 20.0  ;;  %vm887_vm12 = vcmp.gt.f32.partialorder %v4223_v16, 20.0 }
 0x213   : > { %v4226_v1 = vpack.c.bf16 %v903_v7, %v902_v25  ;;  %v801_v36 = vpop.f32.mrb[24].mxu1 }
 0x214   : > { %3714 = vpow2.f32 %v840_v17  ;;  %v842_v37 = vmul.f32 1.442695, %v831_v35  ;;  %v4229_v2 = vadd.f32 %v801_v36, %v4189_v15  ;;  %v803_v38 = vpop.f32.mrb[25].mxu1 }
 0x215   : > { %v804_v40 = vadd.f32 %v803_v38, %v4192_v4  ;;  %v805_v41 = vpop.f32.mrb[26].mxu1 }
 0x216   : > { %v3711_v43 = vpop.eup %3710  ;;  %3716 = vpow2.f32 %v842_v37  ;;  %v4233_v44 = vmul.f32 100.0, %v4229_v2  ;;  %v4236_v45 = vadd.f32 %v805_v41, %v4189_v15  ;;  %v807_v46 = vpop.f32.mrb[27].mxu1 }
 0x217   : > { %v852_v49 = vadd.f32 1.0, %v3711_v43  ;;  %v808_v50 = vadd.f32 %v807_v46, %v4192_v4  ;;  %v904_v56 = vmax.f32 %v804_v40, 0.0 }
 0x218   : > { %v3713_v51 = vpop.eup %3712  ;;  %v832_v52 = vmin.f32 %v4233_v44, 20.0  ;;  %v4241_v53 = vmul.f32 100.0, %v4236_v45  ;;  %vm888_vm13 = vcmp.gt.f32.partialorder %v4233_v44, 20.0 }
 0x219   : > { %3718 = vlog2.f32 %v852_v49  ;;  %v853_v55 = vadd.f32 1.0, %v3713_v51  ;;  %v905_v57 = vmax.f32 %v808_v50, 0.0 }
 0x21a   : > { %v844_v58 = vmul.f32 1.442695, %v832_v52  ;;  %v833_v9 = vmin.f32 %v4241_v53, 20.0  ;;  %vm889_vm14 = vcmp.gt.f32.partialorder %v4241_v53, 20.0 }
 0x21b   : > { %3720 = vlog2.f32 %v853_v55  ;;  %v4244_v60 = vpack.c.bf16 %v905_v57, %v904_v56  ;;  %v811_v10 = vpop.f32.mrb[28].mxu1 }
 0x21c   : > { %3722 = vpow2.f32 %v844_v58  ;;  %v846_v6 = vmul.f32 1.442695, %v833_v9  ;;  %v4247_v8 = vadd.f32 %v811_v10, %v4189_v15  ;;  %v813_v11 = vpop.f32.mrb[29].mxu1 }
 0x21d   : > { %v814_v14 = vadd.f32 %v813_v11, %v4192_v4  ;;  %v815_v18 = vpop.f32.mrb[30].mxu1 }
 0x21e   : > { %v3715_v29 = vpop.eup %3714  ;;  %3724 = vpow2.f32 %v846_v6  ;;  %v4251_v30 = vmul.f32 100.0, %v4247_v8  ;;  %v4254_v34 = vadd.f32 %v815_v18, %v4189_v15  ;;  %v817_v19 = vpop.f32.mrb[31].mxu1 }
 0x21f   : > { %v854_v21 = vadd.f32 1.0, %v3715_v29  ;;  %v818_v22 = vadd.f32 %v817_v19, %v4192_v4  ;;  %v906_v48 = vmax.f32 %v814_v14, 0.0 }
 0x220   : > { %v3717_v23 = vpop.eup %3716  ;;  %v834_v62 = vmin.f32 %v4251_v30, 20.0  ;;  %v4259_v54 = vmul.f32 100.0, %v4254_v34  ;;  %vm890_vm15 = vcmp.gt.f32.partialorder %v4251_v30, 20.0  ;;  %v3499_v30 = vld [vmem:[#allocation2 + $0x280] ss:$8 sps:$4 sm:$0xff]  }
 0x221   : > { %3726 = vlog2.f32 %v854_v21  ;;  %v855_v42 = vadd.f32 1.0, %v3717_v23  ;;  %v907_v31 = vmax.f32 %v818_v22, 0.0 }
 0x222   : > { %v848_v32 = vmul.f32 1.442695, %v834_v62  ;;  %v835_v33 = vmin.f32 %v4259_v54, 20.0  ;;  %vm891_vm1 = vcmp.gt.f32.partialorder %v4259_v54, 20.0  ;;  %v3504_v54 = vld [vmem:[#allocation2 + $0x294] ss:$8 sps:$4 sm:$0xff]  }
 0x223   : > { %v3719_v25 = vpop.eup %3718  ;;  %3728 = vlog2.f32 %v855_v42  ;;  %v915_v15 = vpack.c.bf16 %v907_v31, %v906_v48  ;;  %v3493_v42 = vld [vmem:[#allocation2 + $0x260] ss:$8 sps:$4 sm:$0xff]   ;;  %v3498_v48 = vld [vmem:[#allocation2 + $0x274] ss:$8 sps:$4 sm:$0xff]   ;;  %v3496_v31 = vld [vmem:[#allocation2 + $0x270] ss:$8 sps:$4 sm:$0xff]  }
 0x224   : > { %3730 = vpow2.f32 %v848_v32  ;;  %v850_v7 = vmul.f32 1.442695, %v835_v33  ;;  %v861_v17 = vmul.f32 0.6931472, %v3719_v25  ;;  %v3501_v32 = vld [vmem:[#allocation2 + $0x284] ss:$8 sps:$4 sm:$0xff]  }
 0x225   : > { %v3721_v4 = vpop.eup %3720  ;;  %v3505_v33 = vld [vmem:[#allocation2 + $0x2a0] ss:$8 sps:$4 sm:$0xff]   ;;  %v3510_v25 = vld [vmem:[#allocation2 + $0x2b4] ss:$8 sps:$4 sm:$0xff]  }
 0x226   : > { %v3723_v35 = vpop.eup %3722  ;;  %3732 = vpow2.f32 %v850_v7  ;;  %v863_v36 = vmul.f32 0.6931472, %v3721_v4  ;;  %v876_v37 = vmul.f32 0.01, %v861_v17  ;;  %v3513_v7 = vld [vmem:[#allocation2 + $0x2c4] ss:$8 sps:$4 sm:$0xff]  }
 0x227   : > { %v856_v38 = vadd.f32 1.0, %v3723_v35  ;;  %v3511_v17 = vld [vmem:[#allocation2 + $0x2c0] ss:$8 sps:$4 sm:$0xff]   ;;  %v3516_v4 = vld [vmem:[#allocation2 + $0x2d4] ss:$8 sps:$4 sm:$0xff]  }
 0x228   : > { %v3725_v40 = vpop.eup %3724  ;;  %v877_v41 = vmul.f32 0.01, %v863_v36  ;;  %v892_v46 = vsel %vm884_vm9, %v4195_v3, %v876_v37  ;;  %v3514_v35 = vld [vmem:[#allocation2 + $0x2d0] ss:$8 sps:$4 sm:$0xff]   ;;  %v3519_v36 = vld [vmem:[#allocation2 + $0x2e4] ss:$8 sps:$4 sm:$0xff]  }
 0x229   : > { %3734 = vlog2.f32 %v856_v38  ;;  %v857_v43 = vadd.f32 1.0, %v3725_v40  ;;  %v3517_v37 = vld [vmem:[#allocation2 + $0x2e0] ss:$8 sps:$4 sm:$0xff]   ;;  %v3522_v38 = vld [vmem:[#allocation2 + $0x2f4] ss:$8 sps:$4 sm:$0xff]  }
 0x22a   : > { %v893_v49 = vsel %vm885_vm10, %v4202_v12, %v877_v41  ;;  %v3520_v40 = vld [vmem:[#allocation2 + $0x2f0] ss:$8 sps:$4 sm:$0xff]   ;;  %v3523_v41 = vld [vmem:[%s4770_s5] ss:$8 sps:$4 sm:$0xff]  }
 0x22b   : > { %v3727_v50 = vpop.eup %3726  ;;  %3736 = vlog2.f32 %v857_v43  ;;  %v908_v51 = vpack.c.bf16 %v893_v49, %v892_v46  ;;  %v3525_v43 = vld [vmem:[%s4770_s5 + $0x4] ss:$8 sps:$4 sm:$0xff]   ;;  %v3526_v49 = vld [vmem:[#allocation2 + $0x300] ss:$8 sps:$4 sm:$0xff]  }
 0x22c   : > { %v865_v52 = vmul.f32 0.6931472, %v3727_v50  ;;  %v3528_v46 = vld [vmem:[#allocation2 + $0x304] ss:$8 sps:$4 sm:$0xff]   ;;  %1711 = vmatprep.subr.bf16.mxu0 %v3525_v43  ;;  %v3531_v50 = vld [vmem:[#allocation2 + $0x314] ss:$8 sps:$4 sm:$0xff]  }
 0x22d   : > { %v3729_v55 = vpop.eup %3728  ;;  %1155 = vmatmul.mubr.bf16.vlgmr.msra.gmra.mrb[0].mxu0 %v908_v51  ;;  %v3529_v51 = vld [vmem:[#allocation2 + $0x310] ss:$8 sps:$4 sm:$0xff]  }
 0x22e   : > { %v3731_v56 = vpop.eup %3730  ;;  %1164 = vmatprep.mubr.bf16.mxu0 %v4226_v1  ;;  %v867_v57 = vmul.f32 0.6931472, %v3729_v55  ;;  %v878_v58 = vmul.f32 0.01, %v865_v52  ;;  %1712 = vmatpush1.bf16.msra.mxu0 %v3523_v41  ;;  %v3534_v52 = vld [vmem:[#allocation2 + $0x324] ss:$8 sps:$4 sm:$0xff]  }
 0x22f   : > { %v858_v39 = vadd.f32 1.0, %v3731_v56  ;;  %1944 = vmatprep.subr.bf16.mxu0 %v3528_v46  ;;  %v3532_v55 = vld [vmem:[#allocation2 + $0x320] ss:$8 sps:$4 sm:$0xff]   ;;  %v3537_v56 = vld [vmem:[#allocation2 + $0x334] ss:$8 sps:$4 sm:$0xff]  }
 0x230   : > { %v3733_v9 = vpop.eup %3732  ;;  %v879_v24 = vmul.f32 0.01, %v867_v57  ;;  %v894_v12 = vsel %vm886_vm11, %v4211_v47, %v878_v58  ;;  %v3535_v57 = vld [vmem:[#allocation2 + $0x330] ss:$8 sps:$4 sm:$0xff]   ;;  %v3540_v58 = vld [vmem:[#allocation2 + $0x344] ss:$8 sps:$4 sm:$0xff]  }
 0x231   : > { %3738 = vlog2.f32 %v858_v39  ;;  %v859_v3 = vadd.f32 1.0, %v3733_v9  ;;  %v3543_v39 = vld [vmem:[#allocation2 + $0x354] ss:$8 sps:$4 sm:$0xff]   ;;  %v3541_v9 = vld [vmem:[#allocation2 + $0x350] ss:$8 sps:$4 sm:$0xff]  }
 0x232   : > { %v895_v10 = vsel %vm887_vm12, %v4218_v28, %v879_v24 }
 0x233   : > { %v3735_v6 = vpop.eup %3734  ;;  %3740 = vlog2.f32 %v859_v3  ;;  %v910_v11 = vpack.c.bf16 %v895_v10, %v894_v12 }
 0x234   : > { %v869_v14 = vmul.f32 0.6931472, %v3735_v6 }
 0x235   : > { %v3737_v1 = vpop.eup %3736  ;;  %1165 = vmatmul.mubr.bf16.gmra.mrb[4].mxu0 %v910_v11 }
 0x236   : > { %1174 = vmatprep.mubr.bf16.mxu0 %v4244_v60  ;;  %v871_v18 = vmul.f32 0.6931472, %v3737_v1  ;;  %v880_v29 = vmul.f32 0.01, %v869_v14 }
 0x238   : > { %v881_v19 = vmul.f32 0.01, %v871_v18  ;;  %v896_v27 = vsel %vm888_vm13, %v4229_v2, %v880_v29 }
 0x23a   : > { %v897_v47 = vsel %vm889_vm14, %v4236_v45, %v881_v19  ;;  %v3495_v45 = vld [vmem:[#allocation2 + $0x264] ss:$8 sps:$4 sm:$0xff]  }
 0x23b   : > { %v3739_v28 = vpop.eup %3738  ;;  %v912_v16 = vpack.c.bf16 %v897_v47, %v896_v27  ;;  %1509 = vmatprep.subr.bf16.mxu1 %v3495_v45 }
 0x23c   : > { %v873_v21 = vmul.f32 0.6931472, %v3739_v28  ;;  %1510 = vmatpush1.bf16.msra.mxu1 %v3493_v42 }
 0x23d   : > { %v3741_v22 = vpop.eup %3740  ;;  %1175 = vmatmul.mubr.bf16.gmra.mrb[8].mxu0 %v912_v16  ;;  %1511 = vmatprep.subr.bf16.mxu1 %v3498_v48 }
 0x23e   : > { %1184 = vmatprep.mubr.bf16.mxu0 %v915_v15  ;;  %v875_v23 = vmul.f32 0.6931472, %v3741_v22  ;;  %v882_v62 = vmul.f32 0.01, %v873_v21  ;;  %v3508_v15 = vld [vmem:[#allocation2 + $0x2b0] ss:$8 sps:$4 sm:$0xff]  }
 0x240   : > { %v883_v60 = vmul.f32 0.01, %v875_v23  ;;  %v898_v44 = vsel %vm890_vm15, %v4247_v8, %v882_v62  ;;  %1512 = vmatpush1.bf16.msra.mxu1 %v3496_v31  ;;  %v3502_v8 = vld [vmem:[#allocation2 + $0x290] ss:$8 sps:$4 sm:$0xff]  }
 0x241   : > { %1513 = vmatprep.subr.bf16.mxu1 %v3501_v32 }
 0x242   : > { %v899_v53 = vsel %vm891_vm1, %v4254_v34, %v883_v60  ;;  %v3507_v34 = vld [vmem:[#allocation2 + $0x2a4] ss:$8 sps:$4 sm:$0xff]  }
 0x243   : > { %v914_v2 = vpack.c.bf16 %v899_v53, %v898_v44 }
 0x244   : > { %1514 = vmatpush1.bf16.msra.mxu1 %v3499_v30 }
 0x245   : > { %1185 = vmatmul.mubr.bf16.gmra.mrb[12].mxu0 %v914_v2  ;;  %1515 = vmatprep.subr.bf16.mxu1 %v3504_v54 }
 0x246   : > { %1743 = vmatprep.mubr.bf16.mxu0 %v3945_v0 }
 0x248   : > { %1516 = vmatpush1.bf16.msra.mxu1 %v3502_v8 }
 0x249   : > { %1517 = vmatprep.subr.bf16.mxu1 %v3507_v34 }
 0x24c   : > { %1518 = vmatpush1.bf16.msra.mxu1 %v3505_v33 }
 0x24d   : > { %1519 = vmatprep.subr.bf16.mxu1 %v3510_v25  ;;  %3188 = vmatmul.mubr.msk.bf16.vlgmr.msra.gmra.mrb[16].mxu0 %vm361_vm0, %v4060_v5  ;;  %v3538_v5 = vld [vmem:[#allocation2 + $0x340] ss:$8 sps:$4 sm:$0xff]  }
 0x24e   : > { %1945 = vmatpush1.bf16.msra.mxu0 %v3526_v49  ;;  %1753 = vmatprep.mubr.bf16.mxu0 %v3945_v0 }
 0x24f   : > { %1946 = vmatprep.subr.bf16.mxu0 %v3531_v50 }
 0x250   : > { %1520 = vmatpush1.bf16.msra.mxu1 %v3508_v15 }
 0x251   : > { %1521 = vmatprep.subr.bf16.mxu1 %v3513_v7 }
 0x252   : > { %1947 = vmatpush1.bf16.msra.mxu0 %v3529_v51 }
 0x253   : > { %1948 = vmatprep.subr.bf16.mxu0 %v3534_v52 }
 0x254   : > { %1522 = vmatpush1.bf16.msra.mxu1 %v3511_v17 }
 0x255   : > { %1523 = vmatprep.subr.bf16.mxu1 %v3516_v4  ;;  %3189 = vmatmul.mubr.msk.bf16.gmra.mrb[20].mxu0 %vm361_vm0, %v4067_v13  ;;  %v3120_v13 = vld [vmem:[%s4769_s4 + $0x2] sm:$0x3] }
 0x256   : > { %1949 = vmatpush1.bf16.msra.mxu0 %v3532_v55  ;;  %1763 = vmatprep.mubr.bf16.mxu0 %v3945_v0  ;;  %v4302_v24 = vrot.slane %v3120_v13, %v4086_v61  ;;  %v4305_v3 = vrot.slane %v3120_v13, %v4091_v63 }
 0x257   : > { %1950 = vmatprep.subr.bf16.mxu0 %v3537_v56 }
 0x258   : > { %1524 = vmatpush1.bf16.msra.mxu1 %v3514_v35 }
 0x259   : > { %1525 = vmatprep.subr.bf16.mxu1 %v3519_v36 }
 0x25a   : > { %1951 = vmatpush1.bf16.msra.mxu0 %v3535_v57 }
 0x25b   : > { %1952 = vmatprep.subr.bf16.mxu0 %v3540_v58 }
 0x25c   : > { %1526 = vmatpush1.bf16.msra.mxu1 %v3517_v37 }
 0x25d   : > { %1527 = vmatprep.subr.bf16.mxu1 %v3522_v38  ;;  %3190 = vmatmul.mubr.msk.bf16.gmra.mrb[24].mxu0 %vm361_vm0, %v4074_v20 }
 0x25e   : > { %1953 = vmatpush1.bf16.msra.mxu0 %v3538_v5  ;;  %1773 = vmatprep.mubr.bf16.mxu0 %v3945_v0 }
 0x25f   : > { %1954 = vmatprep.subr.bf16.mxu0 %v3543_v39 }
 0x260   : > { %1528 = vmatpush1.bf16.msra.mxu1 %v3520_v40 }
 0x262   : > { %1955 = vmatpush1.bf16.msra.mxu0 %v3541_v9 }
 0x265   : > { %3191 = vmatmul.mubr.msk.bf16.gmra.mrb[28].mxu0 %vm361_vm0, %v4081_v26 }
 0x300   : > { %v1156_v20 = vpop.f32.mrb[0].mxu0 }
 0x301   : > { %v4308_v12 = vadd.f32 %v1156_v20, %v4302_v24  ;;  %v1158_v0 = vpop.f32.mrb[1].mxu0 }
 0x302   : > { %v1159_v10 = vadd.f32 %v1158_v0, %v4305_v3  ;;  %v1160_v6 = vpop.f32.mrb[2].mxu0 }
 0x303   : > { %v4312_v26 = vmul.f32 100.0, %v4308_v12  ;;  %v4315_v11 = vadd.f32 %v1160_v6, %v4302_v24  ;;  %v1162_v14 = vpop.f32.mrb[3].mxu0 }
 0x304   : > { %v1163_v1 = vadd.f32 %v1162_v14, %v4305_v3  ;;  %v1275_v19 = vmax.f32 %v1159_v10, 0.0 }
 0x305   : > { %v1203_v18 = vmin.f32 %v4312_v26, 20.0  ;;  %v4320_v29 = vmul.f32 100.0, %v4315_v11  ;;  %vm1259_vm0 = vcmp.gt.f32.partialorder %v4312_v26, 20.0 }
 0x306   : > { %v1276_v27 = vmax.f32 %v1163_v1, 0.0 }
 0x307   : > { %v1211_v47 = vmul.f32 1.442695, %v1203_v18  ;;  %v1204_v28 = vmin.f32 %v4320_v29, 20.0  ;;  %vm1260_vm2 = vcmp.gt.f32.partialorder %v4320_v29, 20.0 }
 0x308   : > { %v1284_v16 = vpack.c.bf16 %v1276_v27, %v1275_v19  ;;  %v1166_v21 = vpop.f32.mrb[4].mxu0 }
 0x309   : > { %3742 = vpow2.f32 %v1211_v47  ;;  %v1213_v22 = vmul.f32 1.442695, %v1204_v28  ;;  %v4324_v23 = vadd.f32 %v1166_v21, %v4302_v24  ;;  %v1168_v62 = vpop.f32.mrb[5].mxu0 }
 0x30a   : > { %v1169_v60 = vadd.f32 %v1168_v62, %v4305_v3  ;;  %v1170_v44 = vpop.f32.mrb[6].mxu0  ;;  %1529 = vmatprep.mubr.bf16.mxu1 %v1284_v16 }
 0x30b   : > { %3744 = vpow2.f32 %v1213_v22  ;;  %v4328_v53 = vmul.f32 100.0, %v4324_v23  ;;  %v4331_v2 = vadd.f32 %v1170_v44, %v4302_v24  ;;  %v1172_v45 = vpop.f32.mrb[7].mxu0 }
 0x30c   : > { %v1173_v42 = vadd.f32 %v1172_v45, %v4305_v3  ;;  %v1277_v32 = vmax.f32 %v1169_v60, 0.0 }
 0x30d   : > { %v1205_v48 = vmin.f32 %v4328_v53, 20.0  ;;  %v4336_v31 = vmul.f32 100.0, %v4331_v2  ;;  %vm1261_vm3 = vcmp.gt.f32.partialorder %v4328_v53, 20.0 }
 0x30e   : > { %v1278_v30 = vmax.f32 %v1173_v42, 0.0 }
 0x30f   : > { %v1215_v54 = vmul.f32 1.442695, %v1205_v48  ;;  %v1206_v8 = vmin.f32 %v4336_v31, 20.0  ;;  %vm1262_vm4 = vcmp.gt.f32.partialorder %v4336_v31, 20.0 }
 0x310   : > { %v4339_v34 = vpack.c.bf16 %v1278_v30, %v1277_v32  ;;  %v1176_v33 = vpop.f32.mrb[8].mxu0 }
 0x311   : > { %3746 = vpow2.f32 %v1215_v54  ;;  %v1217_v25 = vmul.f32 1.442695, %v1206_v8  ;;  %v4342_v15 = vadd.f32 %v1176_v33, %v4302_v24  ;;  %v1178_v7 = vpop.f32.mrb[9].mxu0 }
 0x312   : > { %v1179_v17 = vadd.f32 %v1178_v7, %v4305_v3  ;;  %v1180_v4 = vpop.f32.mrb[10].mxu0 }
 0x313   : > { %v3743_v35 = vpop.eup %3742  ;;  %3748 = vpow2.f32 %v1217_v25  ;;  %v4346_v36 = vmul.f32 100.0, %v4342_v15  ;;  %v4349_v37 = vadd.f32 %v1180_v4, %v4302_v24  ;;  %v1182_v38 = vpop.f32.mrb[11].mxu0 }
 0x314   : > { %v1227_v40 = vadd.f32 1.0, %v3743_v35  ;;  %v1183_v41 = vadd.f32 %v1182_v38, %v4305_v3  ;;  %v1279_v51 = vmax.f32 %v1179_v17, 0.0 }
 0x315   : > { %v3745_v43 = vpop.eup %3744  ;;  %v1207_v46 = vmin.f32 %v4346_v36, 20.0  ;;  %v4354_v49 = vmul.f32 100.0, %v4349_v37  ;;  %vm1263_vm5 = vcmp.gt.f32.partialorder %v4346_v36, 20.0 }
 0x316   : > { %3750 = vlog2.f32 %v1227_v40  ;;  %v1228_v50 = vadd.f32 1.0, %v3745_v43  ;;  %v1280_v52 = vmax.f32 %v1183_v41, 0.0 }
 0x317   : > { %v1219_v55 = vmul.f32 1.442695, %v1207_v46  ;;  %v1208_v56 = vmin.f32 %v4354_v49, 20.0  ;;  %vm1264_vm6 = vcmp.gt.f32.partialorder %v4354_v49, 20.0 }
 0x318   : > { %3752 = vlog2.f32 %v1228_v50  ;;  %v4357_v57 = vpack.c.bf16 %v1280_v52, %v1279_v51  ;;  %v1186_v58 = vpop.f32.mrb[12].mxu0 }
 0x319   : > { %3754 = vpow2.f32 %v1219_v55  ;;  %v1221_v5 = vmul.f32 1.442695, %v1208_v56  ;;  %v4360_v39 = vadd.f32 %v1186_v58, %v4302_v24  ;;  %v1188_v9 = vpop.f32.mrb[13].mxu0 }
 0x31a   : > { %v1189_v13 = vadd.f32 %v1188_v9, %v4305_v3  ;;  %v1190_v20 = vpop.f32.mrb[14].mxu0 }
 0x31b   : > { %v3747_v0 = vpop.eup %3746  ;;  %3756 = vpow2.f32 %v1221_v5  ;;  %v4364_v10 = vmul.f32 100.0, %v4360_v39  ;;  %v4367_v6 = vadd.f32 %v1190_v20, %v4302_v24  ;;  %v1192_v14 = vpop.f32.mrb[15].mxu0 }
 0x31c   : > { %v1229_v1 = vadd.f32 1.0, %v3747_v0  ;;  %v1193_v18 = vadd.f32 %v1192_v14, %v4305_v3  ;;  %v1281_v16 = vmax.f32 %v1189_v13, 0.0  ;;  %v3544_v14 = vld [vmem:[#allocation2 + $0x360] ss:$8 sps:$4 sm:$0xff]  }
 0x31d   : > { %v3749_v19 = vpop.eup %3748  ;;  %v1209_v27 = vmin.f32 %v4364_v10, 20.0  ;;  %v4372_v47 = vmul.f32 100.0, %v4367_v6  ;;  %vm1265_vm7 = vcmp.gt.f32.partialorder %v4364_v10, 20.0  ;;  %v3555_v10 = vld [vmem:[#allocation2 + $0x394] ss:$8 sps:$4 sm:$0xff]  }
 0x31e   : > { %3758 = vlog2.f32 %v1229_v1  ;;  %v1230_v28 = vadd.f32 1.0, %v3749_v19  ;;  %v1282_v21 = vmax.f32 %v1193_v18, 0.0  ;;  %v3549_v1 = vld [vmem:[#allocation2 + $0x374] ss:$8 sps:$4 sm:$0xff]   ;;  %v3547_v18 = vld [vmem:[#allocation2 + $0x370] ss:$8 sps:$4 sm:$0xff]  }
 0x31f   : > { %v1223_v22 = vmul.f32 1.442695, %v1209_v27  ;;  %v1210_v62 = vmin.f32 %v4372_v47, 20.0  ;;  %vm1266_vm8 = vcmp.gt.f32.partialorder %v4372_v47, 20.0  ;;  %v3552_v19 = vld [vmem:[#allocation2 + $0x384] ss:$8 sps:$4 sm:$0xff]  }
 0x320   : > { %v3751_v60 = vpop.eup %3750  ;;  %3760 = vlog2.f32 %v1230_v28  ;;  %v1290_v24 = vpack.c.bf16 %v1282_v21, %v1281_v16  ;;  %v3550_v27 = vld [vmem:[#allocation2 + $0x380] ss:$8 sps:$4 sm:$0xff]   ;;  %v3553_v47 = vld [vmem:[#allocation2 + $0x390] ss:$8 sps:$4 sm:$0xff]   ;;  %v3561_v28 = vld [vmem:[#allocation2 + $0x3b4] ss:$8 sps:$4 sm:$0xff]  }
 0x321   : > { %v1236_v44 = vmul.f32 0.6931472, %v3751_v60  ;;  %3762 = vpow2.f32 %v1223_v22  ;;  %v1225_v45 = vmul.f32 1.442695, %v1210_v62  ;;  %v3559_v16 = vld [vmem:[#allocation2 + $0x3b0] ss:$8 sps:$4 sm:$0xff]  }
 0x322   : > { %v3753_v3 = vpop.eup %3752  ;;  %v3564_v21 = vld [vmem:[#allocation2 + $0x3c4] ss:$8 sps:$4 sm:$0xff]   ;;  %v3562_v22 = vld [vmem:[#allocation2 + $0x3c0] ss:$8 sps:$4 sm:$0xff]   ;;  %v3567_v62 = vld [vmem:[#allocation2 + $0x3d4] ss:$8 sps:$4 sm:$0xff]  }
 0x323   : > { %v3755_v42 = vpop.eup %3754  ;;  %v1251_v48 = vmul.f32 0.01, %v1236_v44  ;;  %v1238_v32 = vmul.f32 0.6931472, %v3753_v3  ;;  %3764 = vpow2.f32 %v1225_v45  ;;  %v3565_v60 = vld [vmem:[#allocation2 + $0x3d0] ss:$8 sps:$4 sm:$0xff]  }
 0x324   : > { %v1231_v30 = vadd.f32 1.0, %v3755_v42  ;;  %v3568_v44 = vld [vmem:[#allocation2 + $0x3e0] ss:$8 sps:$4 sm:$0xff]   ;;  %v3573_v45 = vld [vmem:[#allocation2 + $0x3f4] ss:$8 sps:$4 sm:$0xff]  }
 0x325   : > { %v3757_v54 = vpop.eup %3756  ;;  %v1252_v8 = vmul.f32 0.01, %v1238_v32  ;;  %v1267_v25 = vsel %vm1259_vm0, %v4308_v12, %v1251_v48  ;;  %v3571_v3 = vld [vmem:[#allocation2 + $0x3f0] ss:$8 sps:$4 sm:$0xff]   ;;  %v3574_v42 = vld [vmem:[#allocation2 + $0x400] ss:$8 sps:$4 sm:$0xff]  }
 0x326   : > { %3766 = vlog2.f32 %v1231_v30  ;;  %v1232_v33 = vadd.f32 1.0, %v3757_v54  ;;  %v3576_v48 = vld [vmem:[#allocation2 + $0x404] ss:$8 sps:$4 sm:$0xff]   ;;  %v3579_v32 = vld [vmem:[#allocation2 + $0x414] ss:$8 sps:$4 sm:$0xff]  }
 0x327   : > { %v1268_v7 = vsel %vm1260_vm2, %v4315_v11, %v1252_v8  ;;  %2348 = vmatprep.subr.bf16.mxu1 %v3576_v48  ;;  %v3577_v30 = vld [vmem:[#allocation2 + $0x410] ss:$8 sps:$4 sm:$0xff]   ;;  %v3582_v54 = vld [vmem:[#allocation2 + $0x424] ss:$8 sps:$4 sm:$0xff]   ;;  %v3580_v8 = vld [vmem:[#allocation2 + $0x420] ss:$8 sps:$4 sm:$0xff]  }
 0x328   : > { %v3759_v17 = vpop.eup %3758  ;;  %v1283_v4 = vpack.c.bf16 %v1268_v7, %v1267_v25  ;;  %3768 = vlog2.f32 %v1232_v33  ;;  %v3585_v33 = vld [vmem:[#allocation2 + $0x434] ss:$8 sps:$4 sm:$0xff]   ;;  %v3583_v25 = vld [vmem:[#allocation2 + $0x430] ss:$8 sps:$4 sm:$0xff]   ;;  %v3588_v7 = vld [vmem:[#allocation2 + $0x444] ss:$8 sps:$4 sm:$0xff]  }
 0x329   : > { %v1240_v35 = vmul.f32 0.6931472, %v3759_v17  ;;  %v3586_v17 = vld [vmem:[#allocation2 + $0x440] ss:$8 sps:$4 sm:$0xff]  }
 0x32a   : > { %v3761_v38 = vpop.eup %3760  ;;  %1530 = vmatmul.mubr.bf16.vlgmr.msra.gmra.mrb[32].mxu1 %v1283_v4  ;;  %v3591_v4 = vld [vmem:[#allocation2 + $0x454] ss:$8 sps:$4 sm:$0xff]  }
 0x32b   : > { %v3763_v40 = vpop.eup %3762  ;;  %1539 = vmatprep.mubr.bf16.mxu1 %v4339_v34  ;;  %v1242_v41 = vmul.f32 0.6931472, %v3761_v38  ;;  %v1253_v43 = vmul.f32 0.01, %v1240_v35  ;;  %2349 = vmatpush1.bf16.msra.mxu1 %v3574_v42  ;;  %v3589_v35 = vld [vmem:[#allocation2 + $0x450] ss:$8 sps:$4 sm:$0xff]  }
 0x32c   : > { %v1233_v26 = vadd.f32 1.0, %v3763_v40  ;;  %2350 = vmatprep.subr.bf16.mxu1 %v3579_v32  ;;  %v3153_v38 = vld [vmem:[%s4769_s4 + $0x4] sm:$0x3] }
 0x32d   : > { %v3765_v46 = vpop.eup %3764  ;;  %v1254_v29 = vmul.f32 0.01, %v1242_v41  ;;  %v1269_v11 = vsel %vm1261_vm3, %v4324_v23, %v1253_v43  ;;  %v4397_v40 = vrot.slane %v3153_v38, %v4086_v61  ;;  %v4400_v41 = vrot.slane %v3153_v38, %v4091_v63 }
 0x32e   : > { %3770 = vlog2.f32 %v1233_v26  ;;  %v1234_v12 = vadd.f32 1.0, %v3765_v46 }
 0x32f   : > { %v1270_v50 = vsel %vm1262_vm4, %v4331_v2, %v1254_v29  ;;  %2351 = vmatpush1.bf16.msra.mxu1 %v3577_v30 }
 0x330   : > { %v3767_v51 = vpop.eup %3766  ;;  %3772 = vlog2.f32 %v1234_v12  ;;  %v1285_v52 = vpack.c.bf16 %v1270_v50, %v1269_v11  ;;  %2352 = vmatprep.subr.bf16.mxu1 %v3582_v54 }
 0x331   : > { %v1244_v55 = vmul.f32 0.6931472, %v3767_v51 }
 0x332   : > { %v3769_v34 = vpop.eup %3768  ;;  %1540 = vmatmul.mubr.bf16.gmra.mrb[36].mxu1 %v1285_v52 }
 0x333   : > { %1549 = vmatprep.mubr.bf16.mxu1 %v4357_v57  ;;  %v1246_v56 = vmul.f32 0.6931472, %v3769_v34  ;;  %v1255_v58 = vmul.f32 0.01, %v1244_v55  ;;  %2353 = vmatpush1.bf16.msra.mxu1 %v3580_v8 }
 0x334   : > { %2354 = vmatprep.subr.bf16.mxu1 %v3585_v33 }
 0x335   : > { %v1256_v5 = vmul.f32 0.01, %v1246_v56  ;;  %v1271_v53 = vsel %vm1263_vm5, %v4342_v15, %v1255_v58 }
 0x337   : > { %v1272_v23 = vsel %vm1264_vm6, %v4349_v37, %v1256_v5  ;;  %v3546_v37 = vld [vmem:[#allocation2 + $0x364] ss:$8 sps:$4 sm:$0xff]   ;;  %2355 = vmatpush1.bf16.msra.mxu1 %v3583_v25 }
 0x338   : > { %v3771_v2 = vpop.eup %3770  ;;  %v1287_v31 = vpack.c.bf16 %v1272_v23, %v1271_v53  ;;  %1956 = vmatprep.subr.bf16.mxu0 %v3546_v37  ;;  %2356 = vmatprep.subr.bf16.mxu1 %v3588_v7 }
 0x339   : > { %v1248_v9 = vmul.f32 0.6931472, %v3771_v2  ;;  %1957 = vmatpush1.bf16.msra.mxu0 %v3544_v14 }
 0x33a   : > { %v3773_v13 = vpop.eup %3772  ;;  %1550 = vmatmul.mubr.bf16.gmra.mrb[40].mxu1 %v1287_v31  ;;  %1958 = vmatprep.subr.bf16.mxu0 %v3549_v1 }
 0x33b   : > { %1559 = vmatprep.mubr.bf16.mxu1 %v1290_v24  ;;  %v1250_v20 = vmul.f32 0.6931472, %v3773_v13  ;;  %v1257_v0 = vmul.f32 0.01, %v1248_v9  ;;  %v3570_v24 = vld [vmem:[#allocation2 + $0x3e4] ss:$8 sps:$4 sm:$0xff]   ;;  %2357 = vmatpush1.bf16.msra.mxu1 %v3586_v17 }
 0x33c   : > { %2358 = vmatprep.subr.bf16.mxu1 %v3591_v4 }
 0x33d   : > { %v1258_v57 = vmul.f32 0.01, %v1250_v20  ;;  %v1273_v36 = vsel %vm1265_vm7, %v4360_v39, %v1257_v0  ;;  %1959 = vmatpush1.bf16.msra.mxu0 %v3547_v18  ;;  %v3558_v39 = vld [vmem:[#allocation2 + $0x3a4] ss:$8 sps:$4 sm:$0xff]  }
 0x33e   : > { %1960 = vmatprep.subr.bf16.mxu0 %v3552_v19 }
 0x33f   : > { %v1274_v49 = vsel %vm1266_vm8, %v4367_v6, %v1258_v57  ;;  %v3556_v6 = vld [vmem:[#allocation2 + $0x3a0] ss:$8 sps:$4 sm:$0xff]   ;;  %2359 = vmatpush1.bf16.msra.mxu1 %v3589_v35 }
 0x340   : > { %v1289_v15 = vpack.c.bf16 %v1274_v49, %v1273_v36 }
 0x341   : > { %1961 = vmatpush1.bf16.msra.mxu0 %v3550_v27 }
 0x342   : > { %1560 = vmatmul.mubr.bf16.gmra.mrb[44].mxu1 %v1289_v15  ;;  %1962 = vmatprep.subr.bf16.mxu0 %v3555_v10 }
 0x345   : > { %1963 = vmatpush1.bf16.msra.mxu0 %v3553_v47 }
 0x346   : > { %1964 = vmatprep.subr.bf16.mxu0 %v3558_v39 }
 0x349   : > { %1965 = vmatpush1.bf16.msra.mxu0 %v3556_v6 }
 0x34a   : > { %1966 = vmatprep.subr.bf16.mxu0 %v3561_v28 }
 0x34d   : > { %1967 = vmatpush1.bf16.msra.mxu0 %v3559_v16 }
 0x34e   : > { %1968 = vmatprep.subr.bf16.mxu0 %v3564_v21 }
 0x351   : > { %1969 = vmatpush1.bf16.msra.mxu0 %v3562_v22 }
 0x352   : > { %1970 = vmatprep.subr.bf16.mxu0 %v3567_v62 }
 0x355   : > { %1971 = vmatpush1.bf16.msra.mxu0 %v3565_v60 }
 0x356   : > { %1972 = vmatprep.subr.bf16.mxu0 %v3570_v24 }
 0x359   : > { %1973 = vmatpush1.bf16.msra.mxu0 %v3568_v44 }
 0x35a   : > { %1974 = vmatprep.subr.bf16.mxu0 %v3573_v45 }
 0x35d   : > { %1975 = vmatpush1.bf16.msra.mxu0 %v3571_v3 }
 0x3fd   : > { %v1531_v43 = vpop.f32.mrb[32].mxu1 }
 0x3fe   : > { %v4403_v26 = vadd.f32 %v1531_v43, %v4397_v40  ;;  %v1533_v46 = vpop.f32.mrb[33].mxu1 }
 0x3ff   : > { %v1534_v29 = vadd.f32 %v1533_v46, %v4400_v41  ;;  %v1535_v12 = vpop.f32.mrb[34].mxu1 }
 0x400   : > { %v4407_v11 = vmul.f32 100.0, %v4403_v26  ;;  %v4410_v50 = vadd.f32 %v1535_v12, %v4397_v40  ;;  %v1537_v51 = vpop.f32.mrb[35].mxu1 }
 0x401   : > { %v1538_v52 = vadd.f32 %v1537_v51, %v4400_v41  ;;  %v1650_v56 = vmax.f32 %v1534_v29, 0.0 }
 0x402   : > { %v1578_v55 = vmin.f32 %v4407_v11, 20.0  ;;  %v4415_v34 = vmul.f32 100.0, %v4410_v50  ;;  %vm1634_vm9 = vcmp.gt.f32.partialorder %v4407_v11, 20.0 }
 0x403   : > { %v1651_v58 = vmax.f32 %v1538_v52, 0.0 }
 0x404   : > { %v1586_v5 = vmul.f32 1.442695, %v1578_v55  ;;  %v1579_v53 = vmin.f32 %v4415_v34, 20.0  ;;  %vm1635_vm10 = vcmp.gt.f32.partialorder %v4415_v34, 20.0 }
 0x405   : > { %v1659_v23 = vpack.c.bf16 %v1651_v58, %v1650_v56  ;;  %v1541_v2 = vpop.f32.mrb[36].mxu1 }
 0x406   : > { %3774 = vpow2.f32 %v1586_v5  ;;  %v1588_v31 = vmul.f32 1.442695, %v1579_v53  ;;  %v4419_v9 = vadd.f32 %v1541_v2, %v4397_v40  ;;  %v1543_v13 = vpop.f32.mrb[37].mxu1 }
 0x407   : > { %v1544_v20 = vadd.f32 %v1543_v13, %v4400_v41  ;;  %v1545_v0 = vpop.f32.mrb[38].mxu1  ;;  %1976 = vmatprep.mubr.bf16.mxu0 %v1659_v23 }
 0x408   : > { %3776 = vpow2.f32 %v1588_v31  ;;  %v4423_v57 = vmul.f32 100.0, %v4419_v9  ;;  %v4426_v36 = vadd.f32 %v1545_v0, %v4397_v40  ;;  %v1547_v49 = vpop.f32.mrb[39].mxu1 }
 0x409   : > { %v1548_v15 = vadd.f32 %v1547_v49, %v4400_v41  ;;  %v1652_v1 = vmax.f32 %v1544_v20, 0.0 }
 0x40a   : > { %v1580_v37 = vmin.f32 %v4423_v57, 20.0  ;;  %v4431_v14 = vmul.f32 100.0, %v4426_v36  ;;  %vm1636_vm11 = vcmp.gt.f32.partialorder %v4423_v57, 20.0 }
 0x40b   : > { %v1653_v18 = vmax.f32 %v1548_v15, 0.0 }
 0x40c   : > { %v1590_v19 = vmul.f32 1.442695, %v1580_v37  ;;  %v1581_v27 = vmin.f32 %v4431_v14, 20.0  ;;  %vm1637_vm12 = vcmp.gt.f32.partialorder %v4431_v14, 20.0 }
 0x40d   : > { %v4434_v10 = vpack.c.bf16 %v1653_v18, %v1652_v1  ;;  %v1551_v47 = vpop.f32.mrb[40].mxu1 }
 0x40e   : > { %3778 = vpow2.f32 %v1590_v19  ;;  %v1592_v39 = vmul.f32 1.442695, %v1581_v27  ;;  %v4437_v6 = vadd.f32 %v1551_v47, %v4397_v40  ;;  %v1553_v28 = vpop.f32.mrb[41].mxu1 }
 0x40f   : > { %v1554_v16 = vadd.f32 %v1553_v28, %v4400_v41  ;;  %v1555_v21 = vpop.f32.mrb[42].mxu1 }
 0x410   : > { %v3775_v22 = vpop.eup %3774  ;;  %3780 = vpow2.f32 %v1592_v39  ;;  %v4441_v62 = vmul.f32 100.0, %v4437_v6  ;;  %v4444_v60 = vadd.f32 %v1555_v21, %v4397_v40  ;;  %v1557_v24 = vpop.f32.mrb[43].mxu1 }
 0x411   : > { %v1602_v44 = vadd.f32 1.0, %v3775_v22  ;;  %v1558_v45 = vadd.f32 %v1557_v24, %v4400_v41  ;;  %v1654_v30 = vmax.f32 %v1554_v16, 0.0 }
 0x412   : > { %v3777_v3 = vpop.eup %3776  ;;  %v1582_v42 = vmin.f32 %v4441_v62, 20.0  ;;  %v4449_v48 = vmul.f32 100.0, %v4444_v60  ;;  %vm1638_vm13 = vcmp.gt.f32.partialorder %v4441_v62, 20.0 }
 0x413   : > { %3782 = vlog2.f32 %v1602_v44  ;;  %v1603_v32 = vadd.f32 1.0, %v3777_v3  ;;  %v1655_v54 = vmax.f32 %v1558_v45, 0.0 }
 0x414   : > { %v1594_v8 = vmul.f32 1.442695, %v1582_v42  ;;  %v1583_v33 = vmin.f32 %v4449_v48, 20.0  ;;  %vm1639_vm14 = vcmp.gt.f32.partialorder %v4449_v48, 20.0 }
 0x415   : > { %3784 = vlog2.f32 %v1603_v32  ;;  %v4452_v25 = vpack.c.bf16 %v1655_v54, %v1654_v30  ;;  %v1561_v7 = vpop.f32.mrb[44].mxu1 }
 0x416   : > { %3786 = vpow2.f32 %v1594_v8  ;;  %v1596_v17 = vmul.f32 1.442695, %v1583_v33  ;;  %v4455_v4 = vadd.f32 %v1561_v7, %v4397_v40  ;;  %v1563_v35 = vpop.f32.mrb[45].mxu1 }
 0x417   : > { %v1564_v38 = vadd.f32 %v1563_v35, %v4400_v41  ;;  %v1565_v43 = vpop.f32.mrb[46].mxu1 }
 0x418   : > { %v3779_v46 = vpop.eup %3778  ;;  %3788 = vpow2.f32 %v1596_v17  ;;  %v4459_v29 = vmul.f32 100.0, %v4455_v4  ;;  %v4462_v12 = vadd.f32 %v1565_v43, %v4397_v40  ;;  %v1567_v51 = vpop.f32.mrb[47].mxu1 }
 0x419   : > { %v1604_v52 = vadd.f32 1.0, %v3779_v46  ;;  %v1568_v55 = vadd.f32 %v1567_v51, %v4400_v41  ;;  %v1656_v23 = vmax.f32 %v1564_v38, 0.0  ;;  %v3592_v51 = vld [vmem:[#allocation2 + $0x460] ss:$8 sps:$4 sm:$0xff]  }
 0x41a   : > { %v3781_v56 = vpop.eup %3780  ;;  %v1584_v58 = vmin.f32 %v4459_v29, 20.0  ;;  %v4467_v5 = vmul.f32 100.0, %v4462_v12  ;;  %vm1640_vm15 = vcmp.gt.f32.partialorder %v4459_v29, 20.0  ;;  %v3603_v29 = vld [vmem:[#allocation2 + $0x494] ss:$8 sps:$4 sm:$0xff]  }
 0x41b   : > { %3790 = vlog2.f32 %v1604_v52  ;;  %v1605_v53 = vadd.f32 1.0, %v3781_v56  ;;  %v1657_v2 = vmax.f32 %v1568_v55, 0.0  ;;  %v3597_v52 = vld [vmem:[#allocation2 + $0x474] ss:$8 sps:$4 sm:$0xff]   ;;  %v3595_v55 = vld [vmem:[#allocation2 + $0x470] ss:$8 sps:$4 sm:$0xff]  }
 0x41c   : > { %v1598_v31 = vmul.f32 1.442695, %v1584_v58  ;;  %v1585_v13 = vmin.f32 %v4467_v5, 20.0  ;;  %vm1641_vm1 = vcmp.gt.f32.partialorder %v4467_v5, 20.0  ;;  %v3600_v56 = vld [vmem:[#allocation2 + $0x484] ss:$8 sps:$4 sm:$0xff]  }
 0x41d   : > { %v3783_v20 = vpop.eup %3782  ;;  %3792 = vlog2.f32 %v1605_v53  ;;  %v1665_v40 = vpack.c.bf16 %v1657_v2, %v1656_v23  ;;  %v3598_v58 = vld [vmem:[#allocation2 + $0x480] ss:$8 sps:$4 sm:$0xff]   ;;  %v3601_v5 = vld [vmem:[#allocation2 + $0x490] ss:$8 sps:$4 sm:$0xff]   ;;  %v3609_v53 = vld [vmem:[#allocation2 + $0x4b4] ss:$8 sps:$4 sm:$0xff]  }
 0x41e   : > { %v1611_v0 = vmul.f32 0.6931472, %v3783_v20  ;;  %3794 = vpow2.f32 %v1598_v31  ;;  %v1600_v49 = vmul.f32 1.442695, %v1585_v13  ;;  %v3607_v23 = vld [vmem:[#allocation2 + $0x4b0] ss:$8 sps:$4 sm:$0xff]  }
 0x41f   : > { %v3785_v41 = vpop.eup %3784  ;;  %v3612_v2 = vld [vmem:[#allocation2 + $0x4c4] ss:$8 sps:$4 sm:$0xff]   ;;  %v3610_v31 = vld [vmem:[#allocation2 + $0x4c0] ss:$8 sps:$4 sm:$0xff]   ;;  %v3615_v13 = vld [vmem:[#allocation2 + $0x4d4] ss:$8 sps:$4 sm:$0xff]  }
 0x420   : > { %v3787_v15 = vpop.eup %3786  ;;  %v1626_v37 = vmul.f32 0.01, %v1611_v0  ;;  %v1613_v1 = vmul.f32 0.6931472, %v3785_v41  ;;  %3796 = vpow2.f32 %v1600_v49  ;;  %v3613_v20 = vld [vmem:[#allocation2 + $0x4d0] ss:$8 sps:$4 sm:$0xff]  }
 0x421   : > { %v1606_v18 = vadd.f32 1.0, %v3787_v15  ;;  %v3616_v0 = vld [vmem:[#allocation2 + $0x4e0] ss:$8 sps:$4 sm:$0xff]   ;;  %v3621_v49 = vld [vmem:[#allocation2 + $0x4f4] ss:$8 sps:$4 sm:$0xff]  }
 0x422   : > { %v3789_v19 = vpop.eup %3788  ;;  %v1627_v27 = vmul.f32 0.01, %v1613_v1  ;;  %v1642_v39 = vsel %vm1634_vm9, %v4403_v26, %v1626_v37  ;;  %v3619_v41 = vld [vmem:[#allocation2 + $0x4f0] ss:$8 sps:$4 sm:$0xff]   ;;  %v3622_v15 = vld [vmem:[#allocation2 + $0x500] ss:$8 sps:$4 sm:$0xff]  }
 0x423   : > { %3798 = vlog2.f32 %v1606_v18  ;;  %v1607_v47 = vadd.f32 1.0, %v3789_v19  ;;  %v3624_v37 = vld [vmem:[#allocation2 + $0x504] ss:$8 sps:$4 sm:$0xff]   ;;  %v3627_v1 = vld [vmem:[#allocation2 + $0x514] ss:$8 sps:$4 sm:$0xff]  }
 0x424   : > { %v1643_v28 = vsel %vm1635_vm10, %v4410_v50, %v1627_v27  ;;  %2723 = vmatprep.subr.bf16.mxu0 %v3624_v37  ;;  %v3625_v18 = vld [vmem:[#allocation2 + $0x510] ss:$8 sps:$4 sm:$0xff]   ;;  %v3630_v19 = vld [vmem:[#allocation2 + $0x524] ss:$8 sps:$4 sm:$0xff]   ;;  %v3628_v27 = vld [vmem:[#allocation2 + $0x520] ss:$8 sps:$4 sm:$0xff]  }
 0x425   : > { %v3791_v16 = vpop.eup %3790  ;;  %v1658_v21 = vpack.c.bf16 %v1643_v28, %v1642_v39  ;;  %3800 = vlog2.f32 %v1607_v47  ;;  %v3633_v47 = vld [vmem:[#allocation2 + $0x534] ss:$8 sps:$4 sm:$0xff]   ;;  %v3631_v39 = vld [vmem:[#allocation2 + $0x530] ss:$8 sps:$4 sm:$0xff]   ;;  %v3636_v28 = vld [vmem:[#allocation2 + $0x544] ss:$8 sps:$4 sm:$0xff]  }
 0x426   : > { %v1615_v22 = vmul.f32 0.6931472, %v3791_v16  ;;  %v3634_v16 = vld [vmem:[#allocation2 + $0x540] ss:$8 sps:$4 sm:$0xff]  }
 0x427   : > { %v3793_v24 = vpop.eup %3792  ;;  %1977 = vmatmul.mubr.bf16.vlgmr.msra.gmra.mrb[16].mxu0 %v1658_v21  ;;  %v3639_v21 = vld [vmem:[#allocation2 + $0x554] ss:$8 sps:$4 sm:$0xff]  }
 0x428   : > { %v3795_v44 = vpop.eup %3794  ;;  %1986 = vmatprep.mubr.bf16.mxu0 %v4434_v10  ;;  %v1617_v45 = vmul.f32 0.6931472, %v3793_v24  ;;  %v1628_v3 = vmul.f32 0.01, %v1615_v22  ;;  %2724 = vmatpush1.bf16.msra.mxu0 %v3622_v15  ;;  %v3637_v22 = vld [vmem:[#allocation2 + $0x550] ss:$8 sps:$4 sm:$0xff]  }
 0x429   : > { %v1608_v11 = vadd.f32 1.0, %v3795_v44  ;;  %2725 = vmatprep.subr.bf16.mxu0 %v3627_v1  ;;  %v3224_v24 = vld [vmem:[%s4769_s4 + $0x6] sm:$0x3] }
 0x42a   : > { %v3797_v42 = vpop.eup %3796  ;;  %v1629_v34 = vmul.f32 0.01, %v1617_v45  ;;  %v1644_v50 = vsel %vm1636_vm11, %v4419_v9, %v1628_v3  ;;  %v4492_v44 = vrot.slane %v3224_v24, %v4086_v61  ;;  %v4495_v45 = vrot.slane %v3224_v24, %v4091_v63 }
 0x42b   : > { %3802 = vlog2.f32 %v1608_v11  ;;  %v1609_v26 = vadd.f32 1.0, %v3797_v42 }
 0x42c   : > { %v1645_v32 = vsel %vm1637_vm12, %v4426_v36, %v1629_v34  ;;  %2726 = vmatpush1.bf16.msra.mxu0 %v3625_v18 }
 0x42d   : > { %v3799_v30 = vpop.eup %3798  ;;  %3804 = vlog2.f32 %v1609_v26  ;;  %v1660_v54 = vpack.c.bf16 %v1645_v32, %v1644_v50  ;;  %2727 = vmatprep.subr.bf16.mxu0 %v3630_v19 }
 0x42e   : > { %v1619_v8 = vmul.f32 0.6931472, %v3799_v30 }
 0x42f   : > { %v3801_v10 = vpop.eup %3800  ;;  %1987 = vmatmul.mubr.bf16.gmra.mrb[20].mxu0 %v1660_v54 }
 0x430   : > { %1996 = vmatprep.mubr.bf16.mxu0 %v4452_v25  ;;  %v1621_v33 = vmul.f32 0.6931472, %v3801_v10  ;;  %v1630_v7 = vmul.f32 0.01, %v1619_v8  ;;  %2728 = vmatpush1.bf16.msra.mxu0 %v3628_v27 }
 0x431   : > { %2729 = vmatprep.subr.bf16.mxu0 %v3633_v47 }
 0x432   : > { %v1631_v17 = vmul.f32 0.01, %v1621_v33  ;;  %v1646_v57 = vsel %vm1638_vm13, %v4437_v6, %v1630_v7 }
 0x434   : > { %v1647_v9 = vsel %vm1639_vm14, %v4444_v60, %v1631_v17  ;;  %v3594_v60 = vld [vmem:[#allocation2 + $0x464] ss:$8 sps:$4 sm:$0xff]   ;;  %2730 = vmatpush1.bf16.msra.mxu0 %v3631_v39 }
 0x435   : > { %v3803_v36 = vpop.eup %3802  ;;  %v1662_v14 = vpack.c.bf16 %v1647_v9, %v1646_v57  ;;  %2360 = vmatprep.subr.bf16.mxu1 %v3594_v60  ;;  %2731 = vmatprep.subr.bf16.mxu0 %v3636_v28 }
 0x436   : > { %v1623_v35 = vmul.f32 0.6931472, %v3803_v36  ;;  %2361 = vmatpush1.bf16.msra.mxu1 %v3592_v51 }
 0x437   : > { %v3805_v38 = vpop.eup %3804  ;;  %1997 = vmatmul.mubr.bf16.gmra.mrb[24].mxu0 %v1662_v14  ;;  %2362 = vmatprep.subr.bf16.mxu1 %v3597_v52 }
 0x438   : > { %2006 = vmatprep.mubr.bf16.mxu0 %v1665_v40  ;;  %v1625_v43 = vmul.f32 0.6931472, %v3805_v38  ;;  %v1632_v46 = vmul.f32 0.01, %v1623_v35  ;;  %v3618_v40 = vld [vmem:[#allocation2 + $0x4e4] ss:$8 sps:$4 sm:$0xff]   ;;  %2732 = vmatpush1.bf16.msra.mxu0 %v3634_v16 }
 0x439   : > { %2733 = vmatprep.subr.bf16.mxu0 %v3639_v21 }
 0x43a   : > { %v1633_v25 = vmul.f32 0.01, %v1625_v43  ;;  %v1648_v62 = vsel %vm1640_vm15, %v4455_v4, %v1632_v46  ;;  %2363 = vmatpush1.bf16.msra.mxu1 %v3595_v55  ;;  %v3606_v4 = vld [vmem:[#allocation2 + $0x4a4] ss:$8 sps:$4 sm:$0xff]  }
 0x43b   : > { %2364 = vmatprep.subr.bf16.mxu1 %v3600_v56 }
 0x43c   : > { %v1649_v48 = vsel %vm1641_vm1, %v4462_v12, %v1633_v25  ;;  %v3604_v12 = vld [vmem:[#allocation2 + $0x4a0] ss:$8 sps:$4 sm:$0xff]   ;;  %2734 = vmatpush1.bf16.msra.mxu0 %v3637_v22 }
 0x43d   : > { %v1664_v6 = vpack.c.bf16 %v1649_v48, %v1648_v62 }
 0x43e   : > { %2365 = vmatpush1.bf16.msra.mxu1 %v3598_v58 }
 0x43f   : > { %2007 = vmatmul.mubr.bf16.gmra.mrb[28].mxu0 %v1664_v6  ;;  %2366 = vmatprep.subr.bf16.mxu1 %v3603_v29 }
 0x442   : > { %2367 = vmatpush1.bf16.msra.mxu1 %v3601_v5 }
 0x443   : > { %2368 = vmatprep.subr.bf16.mxu1 %v3606_v4 }
 0x446   : > { %2369 = vmatpush1.bf16.msra.mxu1 %v3604_v12 }
 0x447   : > { %2370 = vmatprep.subr.bf16.mxu1 %v3609_v53 }
 0x44a   : > { %2371 = vmatpush1.bf16.msra.mxu1 %v3607_v23 }
 0x44b   : > { %2372 = vmatprep.subr.bf16.mxu1 %v3612_v2 }
 0x44e   : > { %2373 = vmatpush1.bf16.msra.mxu1 %v3610_v31 }
 0x44f   : > { %2374 = vmatprep.subr.bf16.mxu1 %v3615_v13 }
 0x452   : > { %2375 = vmatpush1.bf16.msra.mxu1 %v3613_v20 }
 0x453   : > { %2376 = vmatprep.subr.bf16.mxu1 %v3618_v40 }
 0x456   : > { %2377 = vmatpush1.bf16.msra.mxu1 %v3616_v0 }
 0x457   : > { %2378 = vmatprep.subr.bf16.mxu1 %v3621_v49 }
 0x45a   : > { %2379 = vmatpush1.bf16.msra.mxu1 %v3619_v41 }
 0x4fa   : > { %v1978_v3 = vpop.f32.mrb[16].mxu0 }
 0x4fb   : > { %v4498_v11 = vadd.f32 %v4492_v44, %v1978_v3  ;;  %v1980_v42 = vpop.f32.mrb[17].mxu0 }
 0x4fc   : > { %v2031_v34 = vadd.f32 %v4495_v45, %v1980_v42  ;;  %v1982_v26 = vpop.f32.mrb[18].mxu0 }
 0x4fd   : > { %v4502_v50 = vmul.f32 100.0, %v4498_v11  ;;  %v4505_v32 = vadd.f32 %v4492_v44, %v1982_v26  ;;  %v1984_v30 = vpop.f32.mrb[19].mxu0 }
 0x4fe   : > { %v2033_v54 = vadd.f32 %v4495_v45, %v1984_v30  ;;  %v2126_v33 = vmax.f32 %v2031_v34, 0.0 }
 0x4ff   : > { %v2054_v8 = vmin.f32 %v4502_v50, 20.0  ;;  %v4510_v10 = vmul.f32 100.0, %v4505_v32  ;;  %vm2110_vm0 = vcmp.gt.f32.partialorder %v4502_v50, 20.0 }
 0x500   : > { %v2127_v7 = vmax.f32 %v2033_v54, 0.0 }
 0x501   : > { %v2062_v17 = vmul.f32 1.442695, %v2054_v8  ;;  %v2055_v57 = vmin.f32 %v4510_v10, 20.0  ;;  %vm2111_vm2 = vcmp.gt.f32.partialorder %v4510_v10, 20.0 }
 0x502   : > { %v2135_v9 = vpack.c.bf16 %v2127_v7, %v2126_v33  ;;  %v1988_v36 = vpop.f32.mrb[20].mxu0 }
 0x503   : > { %3806 = vpow2.f32 %v2062_v17  ;;  %v2064_v14 = vmul.f32 1.442695, %v2055_v57  ;;  %v4514_v35 = vadd.f32 %v4492_v44, %v1988_v36  ;;  %v1990_v38 = vpop.f32.mrb[21].mxu0 }
 0x504   : > { %v2035_v43 = vadd.f32 %v4495_v45, %v1990_v38  ;;  %v1992_v46 = vpop.f32.mrb[22].mxu0  ;;  %2380 = vmatprep.mubr.bf16.mxu1 %v2135_v9 }
 0x505   : > { %3808 = vpow2.f32 %v2064_v14  ;;  %v4518_v25 = vmul.f32 100.0, %v4514_v35  ;;  %v4521_v62 = vadd.f32 %v4492_v44, %v1992_v46  ;;  %v1994_v48 = vpop.f32.mrb[23].mxu0 }
 0x506   : > { %v2037_v6 = vadd.f32 %v4495_v45, %v1994_v48  ;;  %v2128_v52 = vmax.f32 %v2035_v43, 0.0 }
 0x507   : > { %v2056_v60 = vmin.f32 %v4518_v25, 20.0  ;;  %v4526_v51 = vmul.f32 100.0, %v4521_v62  ;;  %vm2112_vm3 = vcmp.gt.f32.partialorder %v4518_v25, 20.0 }
 0x508   : > { %v2129_v55 = vmax.f32 %v2037_v6, 0.0 }
 0x509   : > { %v2066_v56 = vmul.f32 1.442695, %v2056_v60  ;;  %v2057_v58 = vmin.f32 %v4526_v51, 20.0  ;;  %vm2113_vm4 = vcmp.gt.f32.partialorder %v4526_v51, 20.0 }
 0x50a   : > { %v4529_v29 = vpack.c.bf16 %v2129_v55, %v2128_v52  ;;  %v1998_v5 = vpop.f32.mrb[24].mxu0 }
 0x50b   : > { %3810 = vpow2.f32 %v2066_v56  ;;  %v2068_v4 = vmul.f32 1.442695, %v2057_v58  ;;  %v4532_v12 = vadd.f32 %v4492_v44, %v1998_v5  ;;  %v2000_v53 = vpop.f32.mrb[25].mxu0 }
 0x50c   : > { %v2039_v23 = vadd.f32 %v4495_v45, %v2000_v53  ;;  %v2002_v2 = vpop.f32.mrb[26].mxu0 }
 0x50d   : > { %v3807_v31 = vpop.eup %3806  ;;  %3812 = vpow2.f32 %v2068_v4  ;;  %v4536_v13 = vmul.f32 100.0, %v4532_v12  ;;  %v4539_v20 = vadd.f32 %v4492_v44, %v2002_v2  ;;  %v2004_v40 = vpop.f32.mrb[27].mxu0 }
 0x50e   : > { %v2078_v0 = vadd.f32 1.0, %v3807_v31  ;;  %v2041_v49 = vadd.f32 %v4495_v45, %v2004_v40  ;;  %v2130_v18 = vmax.f32 %v2039_v23, 0.0 }
 0x50f   : > { %v3809_v41 = vpop.eup %3808  ;;  %v2058_v15 = vmin.f32 %v4536_v13, 20.0  ;;  %v4544_v37 = vmul.f32 100.0, %v4539_v20  ;;  %vm2114_vm5 = vcmp.gt.f32.partialorder %v4536_v13, 20.0 }
 0x510   : > { %3814 = vlog2.f32 %v2078_v0  ;;  %v2079_v1 = vadd.f32 1.0, %v3809_v41  ;;  %v2131_v19 = vmax.f32 %v2041_v49, 0.0 }
 0x511   : > { %v2070_v27 = vmul.f32 1.442695, %v2058_v15  ;;  %v2059_v47 = vmin.f32 %v4544_v37, 20.0  ;;  %vm2115_vm6 = vcmp.gt.f32.partialorder %v4544_v37, 20.0 }
 0x512   : > { %3816 = vlog2.f32 %v2079_v1  ;;  %v4547_v39 = vpack.c.bf16 %v2131_v19, %v2130_v18  ;;  %v2008_v28 = vpop.f32.mrb[28].mxu0 }
 0x513   : > { %3818 = vpow2.f32 %v2070_v27  ;;  %v2072_v16 = vmul.f32 1.442695, %v2059_v47  ;;  %v4550_v21 = vadd.f32 %v4492_v44, %v2008_v28  ;;  %v2010_v22 = vpop.f32.mrb[29].mxu0 }
 0x514   : > { %v2043_v24 = vadd.f32 %v4495_v45, %v2010_v22  ;;  %v2012_v3 = vpop.f32.mrb[30].mxu0 }
 0x515   : > { %v3811_v42 = vpop.eup %3810  ;;  %3820 = vpow2.f32 %v2072_v16  ;;  %v4554_v34 = vmul.f32 100.0, %v4550_v21  ;;  %v4557_v26 = vadd.f32 %v4492_v44, %v2012_v3  ;;  %v2014_v30 = vpop.f32.mrb[31].mxu0 }
 0x516   : > { %v2080_v54 = vadd.f32 1.0, %v3811_v42  ;;  %v2045_v8 = vadd.f32 %v4495_v45, %v2014_v30  ;;  %v2132_v9 = vmax.f32 %v2043_v24, 0.0  ;;  %v3640_v30 = vld [vmem:[#allocation2 + $0x560] ss:$8 sps:$4 sm:$0xff]  }
 0x517   : > { %v3813_v33 = vpop.eup %3812  ;;  %v2060_v7 = vmin.f32 %v4554_v34, 20.0  ;;  %v4562_v17 = vmul.f32 100.0, %v4557_v26  ;;  %vm2116_vm7 = vcmp.gt.f32.partialorder %v4554_v34, 20.0  ;;  %v3651_v34 = vld [vmem:[#allocation2 + $0x594] ss:$8 sps:$4 sm:$0xff]  }
 0x518   : > { %3822 = vlog2.f32 %v2080_v54  ;;  %v2081_v57 = vadd.f32 1.0, %v3813_v33  ;;  %v2133_v36 = vmax.f32 %v2045_v8, 0.0  ;;  %v3645_v54 = vld [vmem:[#allocation2 + $0x574] ss:$8 sps:$4 sm:$0xff]   ;;  %v3643_v8 = vld [vmem:[#allocation2 + $0x570] ss:$8 sps:$4 sm:$0xff]  }
 0x519   : > { %v2074_v14 = vmul.f32 1.442695, %v2060_v7  ;;  %v2061_v38 = vmin.f32 %v4562_v17, 20.0  ;;  %vm2117_vm8 = vcmp.gt.f32.partialorder %v4562_v17, 20.0  ;;  %v3648_v33 = vld [vmem:[#allocation2 + $0x584] ss:$8 sps:$4 sm:$0xff]  }
 0x51a   : > { %v3815_v43 = vpop.eup %3814  ;;  %3824 = vlog2.f32 %v2081_v57  ;;  %v2141_v44 = vpack.c.bf16 %v2133_v36, %v2132_v9  ;;  %v3646_v7 = vld [vmem:[#allocation2 + $0x580] ss:$8 sps:$4 sm:$0xff]   ;;  %v3649_v17 = vld [vmem:[#allocation2 + $0x590] ss:$8 sps:$4 sm:$0xff]   ;;  %v3657_v57 = vld [vmem:[#allocation2 + $0x5b4] ss:$8 sps:$4 sm:$0xff]  }
 0x51b   : > { %v2087_v46 = vmul.f32 0.6931472, %v3815_v43  ;;  %3826 = vpow2.f32 %v2074_v14  ;;  %v2076_v48 = vmul.f32 1.442695, %v2061_v38  ;;  %v3655_v9 = vld [vmem:[#allocation2 + $0x5b0] ss:$8 sps:$4 sm:$0xff]  }
 0x51c   : > { %v3817_v45 = vpop.eup %3816  ;;  %v3660_v36 = vld [vmem:[#allocation2 + $0x5c4] ss:$8 sps:$4 sm:$0xff]   ;;  %v3658_v14 = vld [vmem:[#allocation2 + $0x5c0] ss:$8 sps:$4 sm:$0xff]   ;;  %v3663_v38 = vld [vmem:[#allocation2 + $0x5d4] ss:$8 sps:$4 sm:$0xff]  }
 0x51d   : > { %v3819_v6 = vpop.eup %3818  ;;  %v2102_v60 = vmul.f32 0.01, %v2087_v46  ;;  %v2089_v52 = vmul.f32 0.6931472, %v3817_v45  ;;  %3828 = vpow2.f32 %v2076_v48  ;;  %v3661_v43 = vld [vmem:[#allocation2 + $0x5d0] ss:$8 sps:$4 sm:$0xff]  }
 0x51e   : > { %v2082_v55 = vadd.f32 1.0, %v3819_v6  ;;  %v3664_v46 = vld [vmem:[#allocation2 + $0x5e0] ss:$8 sps:$4 sm:$0xff]   ;;  %v3669_v48 = vld [vmem:[#allocation2 + $0x5f4] ss:$8 sps:$4 sm:$0xff]  }
 0x51f   : > { %v3821_v56 = vpop.eup %3820  ;;  %v2103_v58 = vmul.f32 0.01, %v2089_v52  ;;  %v2118_v4 = vsel %vm2110_vm0, %v4498_v11, %v2102_v60  ;;  %v3667_v45 = vld [vmem:[#allocation2 + $0x5f0] ss:$8 sps:$4 sm:$0xff]   ;;  %v3670_v6 = vld [vmem:[%s4771_s6] sm:$0xff]   ;;  %v3671_v60 = vld [vmem:[%s4771_s6 + $0x8] sm:$0xff]  }
 0x520   : > { %3830 = vlog2.f32 %v2082_v55  ;;  %v2083_v5 = vadd.f32 1.0, %v3821_v56  ;;  %3314 = vmatprep.subr.bf16.mxu1 %v3670_v6  ;;  %v3672_v52 = vld [vmem:[%s4771_s6 + $0x10] sm:$0xff]   ;;  %v3673_v55 = vld [vmem:[%s4771_s6 + $0x18] sm:$0xff]   ;;  %v3225_v56 = vld [vmem:[%s4769_s4 + $0x8] sm:$0x3] }
 0x521   : > { %v2119_v53 = vsel %vm2111_vm2, %v4505_v32, %v2103_v58  ;;  %v4599_v58 = vrot.slane %v3225_v56, %v4086_v61 }
 0x522   : > { %v3823_v23 = vpop.eup %3822  ;;  %v2134_v2 = vpack.c.bf16 %v2119_v53, %v2118_v4  ;;  %3832 = vlog2.f32 %v2083_v5  ;;  %v4602_v5 = vrot.slane %v3225_v56, %v4091_v63 }
 0x523   : > { %v2091_v31 = vmul.f32 0.6931472, %v3823_v23 }
 0x524   : > { %v3825_v40 = vpop.eup %3824  ;;  %2381 = vmatmul.mubr.bf16.vlgmr.msra.gmra.mrb[48].mxu1 %v2134_v2 }
 0x525   : > { %v3827_v0 = vpop.eup %3826  ;;  %2390 = vmatprep.mubr.bf16.mxu1 %v4529_v29  ;;  %v2093_v49 = vmul.f32 0.6931472, %v3825_v40  ;;  %v2104_v41 = vmul.f32 0.01, %v2091_v31  ;;  %3315 = vmatpush3.bf16.msra.mxu1 %v3670_v6 }
 0x526   : > { %v2084_v50 = vadd.f32 1.0, %v3827_v0  ;;  %3316 = vmatprep.subr.bf16.mxu1 %v3671_v60 }
 0x527   : > { %v3829_v15 = vpop.eup %3828  ;;  %v2105_v10 = vmul.f32 0.01, %v2093_v49  ;;  %v2120_v32 = vsel %vm2112_vm3, %v4514_v35, %v2104_v41 }
 0x528   : > { %3834 = vlog2.f32 %v2084_v50  ;;  %v2085_v11 = vadd.f32 1.0, %v3829_v15 }
 0x529   : > { %v2121_v1 = vsel %vm2113_vm4, %v4521_v62, %v2105_v10  ;;  %3317 = vmatpush3.bf16.msra.mxu1 %v3671_v60 }
 0x52a   : > { %v3831_v18 = vpop.eup %3830  ;;  %3836 = vlog2.f32 %v2085_v11  ;;  %v2136_v19 = vpack.c.bf16 %v2121_v1, %v2120_v32  ;;  %3318 = vmatprep.subr.bf16.mxu1 %v3672_v52 }
 0x52b   : > { %v2095_v27 = vmul.f32 0.6931472, %v3831_v18 }
 0x52c   : > { %v3833_v29 = vpop.eup %3832  ;;  %2391 = vmatmul.mubr.bf16.gmra.mrb[52].mxu1 %v2136_v19 }
 0x52d   : > { %2400 = vmatprep.mubr.bf16.mxu1 %v4547_v39  ;;  %v2097_v47 = vmul.f32 0.6931472, %v3833_v29  ;;  %v2106_v28 = vmul.f32 0.01, %v2095_v27  ;;  %3319 = vmatpush3.bf16.msra.mxu1 %v3672_v52 }
 0x52e   : > { %3320 = vmatprep.subr.bf16.mxu1 %v3673_v55 }
 0x52f   : > { %v2107_v16 = vmul.f32 0.01, %v2097_v47  ;;  %v2122_v25 = vsel %vm2114_vm5, %v4532_v12, %v2106_v28 }
 0x531   : > { %v2123_v35 = vsel %vm2115_vm6, %v4539_v20, %v2107_v16  ;;  %v3642_v20 = vld [vmem:[#allocation2 + $0x564] ss:$8 sps:$4 sm:$0xff]   ;;  %3321 = vmatpush3.bf16.msra.mxu1 %v3673_v55 }
 0x532   : > { %v3835_v62 = vpop.eup %3834  ;;  %v2138_v51 = vpack.c.bf16 %v2123_v35, %v2122_v25  ;;  %2735 = vmatprep.subr.bf16.mxu0 %v3642_v20 }
 0x533   : > { %v2099_v22 = vmul.f32 0.6931472, %v3835_v62  ;;  %2736 = vmatpush1.bf16.msra.mxu0 %v3640_v30 }
 0x534   : > { %v3837_v24 = vpop.eup %3836  ;;  %2401 = vmatmul.mubr.bf16.gmra.mrb[56].mxu1 %v2138_v51  ;;  %2737 = vmatprep.subr.bf16.mxu0 %v3645_v54 }
 0x535   : > { %2410 = vmatprep.mubr.bf16.mxu1 %v2141_v44  ;;  %v2101_v3 = vmul.f32 0.6931472, %v3837_v24  ;;  %v2108_v42 = vmul.f32 0.01, %v2099_v22  ;;  %v3666_v44 = vld [vmem:[#allocation2 + $0x5e4] ss:$8 sps:$4 sm:$0xff]  }
 0x537   : > { %v2109_v39 = vmul.f32 0.01, %v2101_v3  ;;  %v2124_v13 = vsel %vm2116_vm7, %v4550_v21, %v2108_v42  ;;  %2738 = vmatpush1.bf16.msra.mxu0 %v3643_v8  ;;  %v3654_v21 = vld [vmem:[#allocation2 + $0x5a4] ss:$8 sps:$4 sm:$0xff]  }
 0x538   : > { %2739 = vmatprep.subr.bf16.mxu0 %v3648_v33 }
 0x539   : > { %v2125_v37 = vsel %vm2117_vm8, %v4557_v26, %v2109_v39  ;;  %v3652_v26 = vld [vmem:[#allocation2 + $0x5a0] ss:$8 sps:$4 sm:$0xff]  }
 0x53a   : > { %v2140_v12 = vpack.c.bf16 %v2125_v37, %v2124_v13 }
 0x53b   : > { %2740 = vmatpush1.bf16.msra.mxu0 %v3646_v7 }
 0x53c   : > { %2411 = vmatmul.mubr.bf16.gmra.mrb[60].mxu1 %v2140_v12  ;;  %2741 = vmatprep.subr.bf16.mxu0 %v3651_v34 }
 0x53f   : > { %2742 = vmatpush1.bf16.msra.mxu0 %v3649_v17 }
 0x540   : > { %2743 = vmatprep.subr.bf16.mxu0 %v3654_v21 }
 0x543   : > { %2744 = vmatpush1.bf16.msra.mxu0 %v3652_v26 }
 0x544   : > { %2745 = vmatprep.subr.bf16.mxu0 %v3657_v57 }
 0x547   : > { %2746 = vmatpush1.bf16.msra.mxu0 %v3655_v9 }
 0x548   : > { %2747 = vmatprep.subr.bf16.mxu0 %v3660_v36 }
 0x54b   : > { %2748 = vmatpush1.bf16.msra.mxu0 %v3658_v14 }
 0x54c   : > { %2749 = vmatprep.subr.bf16.mxu0 %v3663_v38 }
 0x54f   : > { %2750 = vmatpush1.bf16.msra.mxu0 %v3661_v43 }
 0x550   : > { %2751 = vmatprep.subr.bf16.mxu0 %v3666_v44 }
 0x553   : > { %2752 = vmatpush1.bf16.msra.mxu0 %v3664_v46 }
 0x554   : > { %2753 = vmatprep.subr.bf16.mxu0 %v3669_v48 }
 0x557   : > { %2754 = vmatpush1.bf16.msra.mxu0 %v3667_v45 }
 0x5f7   : > { %v2382_v4 = vpop.f32.mrb[48].mxu1 }
 0x5f8   : > { %v4605_v53 = vadd.f32 %v2382_v4, %v4599_v58  ;;  %v2384_v23 = vpop.f32.mrb[49].mxu1 }
 0x5f9   : > { %v2385_v2 = vadd.f32 %v2384_v23, %v4602_v5  ;;  %v2386_v31 = vpop.f32.mrb[50].mxu1 }
 0x5fa   : > { %v4609_v40 = vmul.f32 100.0, %v4605_v53  ;;  %v4612_v0 = vadd.f32 %v2386_v31, %v4599_v58  ;;  %v2388_v49 = vpop.f32.mrb[51].mxu1 }
 0x5fb   : > { %v2389_v41 = vadd.f32 %v2388_v49, %v4602_v5  ;;  %v2501_v10 = vmax.f32 %v2385_v2, 0.0 }
 0x5fc   : > { %v2429_v50 = vmin.f32 %v4609_v40, 20.0  ;;  %v4617_v15 = vmul.f32 100.0, %v4612_v0  ;;  %vm2485_vm9 = vcmp.gt.f32.partialorder %v4609_v40, 20.0 }
 0x5fd   : > { %v2502_v11 = vmax.f32 %v2389_v41, 0.0 }
 0x5fe   : > { %v2437_v32 = vmul.f32 1.442695, %v2429_v50  ;;  %v2430_v1 = vmin.f32 %v4617_v15, 20.0  ;;  %vm2486_vm10 = vcmp.gt.f32.partialorder %v4617_v15, 20.0 }
 0x5ff   : > { %v2510_v18 = vpack.c.bf16 %v2502_v11, %v2501_v10  ;;  %v2392_v19 = vpop.f32.mrb[52].mxu1 }
 0x600   : > { %3838 = vpow2.f32 %v2437_v32  ;;  %v2439_v27 = vmul.f32 1.442695, %v2430_v1  ;;  %v4621_v29 = vadd.f32 %v2392_v19, %v4599_v58  ;;  %v2394_v47 = vpop.f32.mrb[53].mxu1 }
 0x601   : > { %v2395_v28 = vadd.f32 %v2394_v47, %v4602_v5  ;;  %v2396_v16 = vpop.f32.mrb[54].mxu1  ;;  %2755 = vmatprep.mubr.bf16.mxu0 %v2510_v18 }
 0x602   : > { %3840 = vpow2.f32 %v2439_v27  ;;  %v4625_v25 = vmul.f32 100.0, %v4621_v29  ;;  %v4628_v35 = vadd.f32 %v2396_v16, %v4599_v58  ;;  %v2398_v62 = vpop.f32.mrb[55].mxu1 }
 0x603   : > { %v2399_v51 = vadd.f32 %v2398_v62, %v4602_v5  ;;  %v2503_v3 = vmax.f32 %v2395_v28, 0.0 }
 0x604   : > { %v2431_v22 = vmin.f32 %v4625_v25, 20.0  ;;  %v4633_v24 = vmul.f32 100.0, %v4628_v35  ;;  %vm2487_vm11 = vcmp.gt.f32.partialorder %v4625_v25, 20.0 }
 0x605   : > { %v2504_v42 = vmax.f32 %v2399_v51, 0.0 }
 0x606   : > { %v2441_v39 = vmul.f32 1.442695, %v2431_v22  ;;  %v2432_v13 = vmin.f32 %v4633_v24, 20.0  ;;  %vm2488_vm12 = vcmp.gt.f32.partialorder %v4633_v24, 20.0 }
 0x607   : > { %v4636_v37 = vpack.c.bf16 %v2504_v42, %v2503_v3  ;;  %v2402_v12 = vpop.f32.mrb[56].mxu1 }
 0x608   : > { %3842 = vpow2.f32 %v2441_v39  ;;  %v2443_v20 = vmul.f32 1.442695, %v2432_v13  ;;  %v4639_v30 = vadd.f32 %v2402_v12, %v4599_v58  ;;  %v2404_v54 = vpop.f32.mrb[57].mxu1 }
 0x609   : > { %v2405_v8 = vadd.f32 %v2404_v54, %v4602_v5  ;;  %v2406_v33 = vpop.f32.mrb[58].mxu1 }
 0x60a   : > { %v3839_v7 = vpop.eup %3838  ;;  %3844 = vpow2.f32 %v2443_v20  ;;  %v4643_v34 = vmul.f32 100.0, %v4639_v30  ;;  %v4646_v17 = vadd.f32 %v2406_v33, %v4599_v58  ;;  %v2408_v21 = vpop.f32.mrb[59].mxu1 }
 0x60b   : > { %v2453_v26 = vadd.f32 1.0, %v3839_v7  ;;  %v2409_v57 = vadd.f32 %v2408_v21, %v4602_v5  ;;  %v2505_v43 = vmax.f32 %v2405_v8, 0.0 }
 0x60c   : > { %v3841_v9 = vpop.eup %3840  ;;  %v2433_v36 = vmin.f32 %v4643_v34, 20.0  ;;  %v4651_v14 = vmul.f32 100.0, %v4646_v17  ;;  %vm2489_vm13 = vcmp.gt.f32.partialorder %v4643_v34, 20.0 }
 0x60d   : > { %3846 = vlog2.f32 %v2453_v26  ;;  %v2454_v38 = vadd.f32 1.0, %v3841_v9  ;;  %v2506_v44 = vmax.f32 %v2409_v57, 0.0 }
 0x60e   : > { %v2445_v46 = vmul.f32 1.442695, %v2433_v36  ;;  %v2434_v48 = vmin.f32 %v4651_v14, 20.0  ;;  %vm2490_vm14 = vcmp.gt.f32.partialorder %v4651_v14, 20.0 }
 0x60f   : > { %3848 = vlog2.f32 %v2454_v38  ;;  %v4654_v45 = vpack.c.bf16 %v2506_v44, %v2505_v43  ;;  %v2412_v6 = vpop.f32.mrb[60].mxu1 }
 0x610   : > { %3850 = vpow2.f32 %v2445_v46  ;;  %v2447_v60 = vmul.f32 1.442695, %v2434_v48  ;;  %v4657_v52 = vadd.f32 %v2412_v6, %v4599_v58  ;;  %v2414_v55 = vpop.f32.mrb[61].mxu1 }
 0x611   : > { %v2415_v56 = vadd.f32 %v2414_v55, %v4602_v5  ;;  %v2416_v4 = vpop.f32.mrb[62].mxu1 }
 0x612   : > { %v3843_v23 = vpop.eup %3842  ;;  %3852 = vpow2.f32 %v2447_v60  ;;  %v4661_v2 = vmul.f32 100.0, %v4657_v52  ;;  %v4664_v31 = vadd.f32 %v2416_v4, %v4599_v58  ;;  %v2418_v49 = vpop.f32.mrb[63].mxu1 }
 0x613   : > { %v2455_v41 = vadd.f32 1.0, %v3843_v23  ;;  %v2419_v50 = vadd.f32 %v2418_v49, %v4602_v5  ;;  %v2507_v18 = vmax.f32 %v2415_v56, 0.0  ;;  %v3675_v49 = vld [vmem:[%s4771_s6 + $0x28] sm:$0xff]  }
 0x614   : > { %v3845_v10 = vpop.eup %3844  ;;  %v2435_v11 = vmin.f32 %v4661_v2, 20.0  ;;  %v4669_v32 = vmul.f32 100.0, %v4664_v31  ;;  %vm2491_vm15 = vcmp.gt.f32.partialorder %v4661_v2, 20.0  ;;  %v3677_v2 = vld [vmem:[%s4771_s6 + $0x38] sm:$0xff]  }
 0x615   : > { %3854 = vlog2.f32 %v2455_v41  ;;  %v2456_v1 = vadd.f32 1.0, %v3845_v10  ;;  %v2508_v19 = vmax.f32 %v2419_v50, 0.0 }
 0x616   : > { %v2449_v27 = vmul.f32 1.442695, %v2435_v11  ;;  %v2436_v47 = vmin.f32 %v4669_v32, 20.0  ;;  %vm2492_vm1 = vcmp.gt.f32.partialorder %v4669_v32, 20.0 }
 0x617   : > { %v3847_v28 = vpop.eup %3846  ;;  %3856 = vlog2.f32 %v2456_v1  ;;  %v2516_v58 = vpack.c.bf16 %v2508_v19, %v2507_v18 }
 0x618   : > { %v2462_v16 = vmul.f32 0.6931472, %v3847_v28  ;;  %3858 = vpow2.f32 %v2449_v27  ;;  %v2451_v62 = vmul.f32 1.442695, %v2436_v47 }
 0x619   : > { %v3849_v5 = vpop.eup %3848 }
 0x61a   : > { %v3851_v51 = vpop.eup %3850  ;;  %v2477_v22 = vmul.f32 0.01, %v2462_v16  ;;  %v2464_v3 = vmul.f32 0.6931472, %v3849_v5  ;;  %3860 = vpow2.f32 %v2451_v62 }
 0x61b   : > { %v2457_v42 = vadd.f32 1.0, %v3851_v51 }
 0x61c   : > { %v3853_v39 = vpop.eup %3852  ;;  %v2478_v13 = vmul.f32 0.01, %v2464_v3  ;;  %v2493_v20 = vsel %vm2485_vm9, %v4605_v53, %v2477_v22 }
 0x61d   : > { %3862 = vlog2.f32 %v2457_v42  ;;  %v2458_v12 = vadd.f32 1.0, %v3853_v39 }
 0x61e   : > { %v2494_v54 = vsel %vm2486_vm10, %v4612_v0, %v2478_v13 }
 0x61f   : > { %v3855_v8 = vpop.eup %3854  ;;  %v2509_v33 = vpack.c.bf16 %v2494_v54, %v2493_v20  ;;  %3864 = vlog2.f32 %v2458_v12 }
 0x620   : > { %v2466_v7 = vmul.f32 0.6931472, %v3855_v8 }
 0x621   : > { %v3857_v21 = vpop.eup %3856  ;;  %2756 = vmatmul.mubr.bf16.vlgmr.msra.gmra.mrb[32].mxu0 %v2509_v33 }
 0x622   : > { %v3859_v26 = vpop.eup %3858  ;;  %2765 = vmatprep.mubr.bf16.mxu0 %v4636_v37  ;;  %v2468_v57 = vmul.f32 0.6931472, %v3857_v21  ;;  %v2479_v9 = vmul.f32 0.01, %v2466_v7 }
 0x623   : > { %v2459_v40 = vadd.f32 1.0, %v3859_v26 }
 0x624   : > { %v3861_v36 = vpop.eup %3860  ;;  %v2480_v15 = vmul.f32 0.01, %v2468_v57  ;;  %v2495_v0 = vsel %vm2487_vm11, %v4621_v29, %v2479_v9 }
 0x625   : > { %3866 = vlog2.f32 %v2459_v40  ;;  %v2460_v53 = vadd.f32 1.0, %v3861_v36 }
 0x626   : > { %v2496_v38 = vsel %vm2488_vm12, %v4628_v35, %v2480_v15 }
 0x627   : > { %v3863_v43 = vpop.eup %3862  ;;  %3868 = vlog2.f32 %v2460_v53  ;;  %v2511_v44 = vpack.c.bf16 %v2496_v38, %v2495_v0  ;;  %v3291_v38 = vld [vmem:[%s4772_s7] ss:$0 sm:$0xff] }
 0x628   : > { %v2470_v46 = vmul.f32 0.6931472, %v3863_v43 }
 0x629   : > { %v3865_v37 = vpop.eup %3864  ;;  %2766 = vmatmul.mubr.bf16.gmra.mrb[36].mxu0 %v2511_v44 }
 0x62a   : > { %2775 = vmatprep.mubr.bf16.mxu0 %v4654_v45  ;;  %v2472_v48 = vmul.f32 0.6931472, %v3865_v37  ;;  %v2481_v6 = vmul.f32 0.01, %v2470_v46 }
 0x62c   : > { %v2482_v60 = vmul.f32 0.01, %v2472_v48  ;;  %v2497_v25 = vsel %vm2489_vm13, %v4639_v30, %v2481_v6 }
 0x62e   : > { %v2498_v29 = vsel %vm2490_vm14, %v4646_v17, %v2482_v60  ;;  %v3674_v17 = vld [vmem:[%s4771_s6 + $0x20] sm:$0xff]  }
 0x62f   : > { %v3867_v35 = vpop.eup %3866  ;;  %v2513_v24 = vpack.c.bf16 %v2498_v29, %v2497_v25  ;;  %3322 = vmatprep.subr.bf16.mxu1 %v3674_v17 }
 0x630   : > { %v2474_v55 = vmul.f32 0.6931472, %v3867_v35  ;;  %3323 = vmatpush3.bf16.msra.mxu1 %v3674_v17 }
 0x631   : > { %v3869_v56 = vpop.eup %3868  ;;  %2776 = vmatmul.mubr.bf16.gmra.mrb[40].mxu0 %v2513_v24  ;;  %3324 = vmatprep.subr.bf16.mxu1 %v3675_v49 }
 0x632   : > { %2785 = vmatprep.mubr.bf16.mxu0 %v2516_v58  ;;  %v2476_v4 = vmul.f32 0.6931472, %v3869_v56  ;;  %v2483_v23 = vmul.f32 0.01, %v2474_v55 }
 0x634   : > { %v2484_v45 = vmul.f32 0.01, %v2476_v4  ;;  %v2499_v34 = vsel %vm2491_vm15, %v4657_v52, %v2483_v23  ;;  %3325 = vmatpush3.bf16.msra.mxu1 %v3675_v49  ;;  %v3676_v52 = vld [vmem:[%s4771_s6 + $0x30] sm:$0xff]  }
 0x635   : > { %3326 = vmatprep.subr.bf16.mxu1 %v3676_v52 }
 0x636   : > { %v2500_v14 = vsel %vm2492_vm1, %v4664_v31, %v2484_v45  ;;  %v4705_v31 = vld [vmem:[%s4769_s4 + $0xa] sm:$0x3] }
 0x637   : > { %v2515_v30 = vpack.c.bf16 %v2500_v14, %v2499_v34  ;;  %v2560_v41 = vrot.slane %v4705_v31, %v4091_v63 }
 0x638   : > { %3327 = vmatpush3.bf16.msra.mxu1 %v3676_v52 }
 0x639   : > { %2786 = vmatmul.mubr.bf16.gmra.mrb[44].mxu0 %v2515_v30  ;;  %3328 = vmatprep.subr.bf16.mxu1 %v3677_v2 }
 0x63c   : > { %3329 = vmatpush3.bf16.msra.mxu1 %v3677_v2 }
 0x6f4   : > { %v4709_v50 = vpop.f32.mrb[32].mxu0 }
 0x6f5   : > { %v2759_v10 = vpop.f32.mrb[33].mxu0 }
 0x6f6   : > { %v2760_v11 = vadd.f32 %v2759_v10, %v2560_v41  ;;  %v4711_v32 = vpop.f32.mrb[34].mxu0 }
 0x6f7   : > { %v2763_v1 = vpop.f32.mrb[35].mxu0 }
 0x6f8   : > { %v2764_v18 = vadd.f32 %v2763_v1, %v2560_v41  ;;  %v2796_v19 = vmax.f32 %v2760_v11, 0.0 }
 0x6fa   : > { %v2797_v27 = vmax.f32 %v2764_v18, 0.0 }
 0x6fc   : > { %v2804_v47 = vpack.c.bf16 %v2797_v27, %v2796_v19  ;;  %v4713_v28 = vpop.f32.mrb[36].mxu0 }
 0x6fd   : > { %v2769_v58 = vpop.f32.mrb[37].mxu0 }
 0x6fe   : > { %v2770_v16 = vadd.f32 %v2769_v58, %v2560_v41  ;;  %v4715_v62 = vpop.f32.mrb[38].mxu0  ;;  %3330 = vmatprep.mubr.bf16.mxu1 %v2804_v47 }
 0x6ff   : > { %v2773_v5 = vpop.f32.mrb[39].mxu0 }
 0x700   : > { %v2774_v63 = vadd.f32 %v2773_v5, %v2560_v41  ;;  %v2798_v51 = vmax.f32 %v2770_v16, 0.0 }
 0x702   : > { %v2799_v22 = vmax.f32 %v2774_v63, 0.0 }
 0x704   : > { %v2805_v3 = vpack.c.bf16 %v2799_v22, %v2798_v51  ;;  %v4717_v42 = vpop.f32.mrb[40].mxu0 }
 0x705   : > { %v2779_v39 = vpop.f32.mrb[41].mxu0 }
 0x706   : > { %v2780_v13 = vadd.f32 %v2779_v39, %v2560_v41  ;;  %v4719_v12 = vpop.f32.mrb[42].mxu0  ;;  %3331 = vmatmul.mubr.bf16.vlgmr.msra.gmra.mrb[64].mxu1 %v2805_v3 }
 0x707   : > { %v2783_v20 = vpop.f32.mrb[43].mxu0 }
 0x708   : > { %v2784_v54 = vadd.f32 %v2783_v20, %v2560_v41  ;;  %v2800_v8 = vmax.f32 %v2780_v13, 0.0  ;;  %v2985_v13 = vand.u32 127, %v341_v59 }
 0x70a   : > { %v2801_v33 = vmax.f32 %v2784_v54, 0.0  ;;  %v2556_v54 = vrot.slane %v4705_v31, %v4086_v61  ;;  %vm2986_vm0 = vcmp.eq.s32.totalorder %v2985_v13, 1 }
 0x70c   : > { %v2806_v7 = vpack.c.bf16 %v2801_v33, %v2800_v8  ;;  %v4721_v21 = vpop.f32.mrb[44].mxu0  ;;  %v2768_v59 = vadd.f32 %v4713_v28, %v2556_v54  ;;  %v2758_v33 = vadd.f32 %v4709_v50, %v2556_v54  ;;  %v2772_v61 = vadd.f32 %v4715_v62, %v2556_v54 }
 0x70d   : > { %v2789_v26 = vpop.f32.mrb[45].mxu0 }
 0x70e   : > { %v2790_v57 = vadd.f32 %v2789_v26, %v2560_v41  ;;  %v4723_v9 = vpop.f32.mrb[46].mxu0  ;;  %3334 = vmatprep.mubr.bf16.mxu1 %v2806_v7 }
 0x70f   : > { %v2793_v40 = vpop.f32.mrb[47].mxu0 }
 0x710   : > { %v2794_v36 = vadd.f32 %v2793_v40, %v2560_v41  ;;  %v2802_v15 = vmax.f32 %v2790_v57, 0.0  ;;  %v2762_v57 = vadd.f32 %v4711_v32, %v2556_v54 }
 0x712   : > { %v2803_v53 = vmax.f32 %v2794_v36, 0.0 }
 0x714   : > { %v2807_v0 = vpack.c.bf16 %v2803_v53, %v2802_v15 }
 0x716   : > { %3335 = vmatmul.mubr.bf16.gmra.mrb[68].mxu1 %v2807_v0 }
 0x7d9   : > { %v3332_v43 = vpop.f32.mrb[64].mxu1 }
 0x7da   : > { %v2922_v44 = vadd.f32 %v3332_v43, %v3291_v38  ;;  %v2913_v46 = vpop.f32.mrb[65].mxu1 }
 0x7db   : > { %v2914_v37 = vadd.f32 %v3291_v38, %v2913_v46  ;;  %v3333_v48 = vpop.f32.mrb[66].mxu1  ;;  %v2788_v46 = vadd.f32 %v4721_v21, %v2556_v54 }
 0x7dc   : > { %v2946_v6 = vsub.f32 0.0, %v2922_v44  ;;  %v2925_v60 = vadd.f32 %v3333_v48, %v3291_v38  ;;  %v2916_v25 = vpop.f32.mrb[67].mxu1  ;;  %v2778_v48 = vadd.f32 %v4717_v42, %v2556_v54 }
 0x7dd   : > { %v2944_v29 = vsub.f32 0.0, %v2914_v37  ;;  %v2917_v35 = vadd.f32 %v3291_v38, %v2916_v25 }
 0x7de   : > { %v2956_v24 = vmul.f32 1.442695, %v2946_v6  ;;  %v2947_v55 = vsub.f32 0.0, %v2925_v60  ;;  %v2792_v60 = vadd.f32 %v4723_v9, %v2556_v54 }
 0x7df   : > { %v2952_v56 = vmul.f32 1.442695, %v2944_v29  ;;  %v2945_v4 = vsub.f32 0.0, %v2917_v35  ;;  %v2782_v35 = vadd.f32 %v4719_v12, %v2556_v54 }
 0x7e0   : > { %3870 = vpow2.f32 %v2956_v24  ;;  %v2958_v23 = vmul.f32 1.442695, %v2947_v55 }
 0x7e1   : > { %3872 = vpow2.f32 %v2952_v56  ;;  %v2954_v45 = vmul.f32 1.442695, %v2945_v4 }
 0x7e2   : > { %3874 = vpow2.f32 %v2958_v23 }
 0x7e3   : > { %3876 = vpow2.f32 %v2954_v45 }
 0x7e9   : > { %v3336_v34 = vpop.f32.mrb[68].mxu1 }
 0x7ea   : > { %v3871_v14 = vpop.eup %3870  ;;  %v2938_v30 = vadd.f32 %v3336_v34, %v3291_v38  ;;  %v2929_v17 = vpop.f32.mrb[69].mxu1 }
 0x7eb   : > { %v3873_v49 = vpop.eup %3872  ;;  %v2970_v52 = vadd.f32 1.0, %v3871_v14  ;;  %v2930_v2 = vadd.f32 %v3291_v38, %v2929_v17  ;;  %v3337_v41 = vpop.f32.mrb[70].mxu1 }
 0x7ec   : > { %v3875_v10 = vpop.eup %3874  ;;  %v2968_v11 = vadd.f32 1.0, %v3873_v49  ;;  %v2950_v1 = vsub.f32 0.0, %v2938_v30  ;;  %v2941_v18 = vadd.f32 %v3337_v41, %v3291_v38  ;;  %v2932_v19 = vpop.f32.mrb[71].mxu1 }
 0x7ed   : > { %v3877_v27 = vpop.eup %3876  ;;  %3878 = vrcp.f32 %v2970_v52  ;;  %v2971_v47 = vadd.f32 1.0, %v3875_v10  ;;  %v2948_v58 = vsub.f32 0.0, %v2930_v2  ;;  %v2933_v16 = vadd.f32 %v3291_v38, %v2932_v19 }
 0x7ee   : > { %3880 = vrcp.f32 %v2968_v11  ;;  %v2969_v5 = vadd.f32 1.0, %v3877_v27  ;;  %v2964_v63 = vmul.f32 1.442695, %v2950_v1  ;;  %v2951_v51 = vsub.f32 0.0, %v2941_v18 }
 0x7ef   : > { %3882 = vrcp.f32 %v2971_v47  ;;  %v2960_v22 = vmul.f32 1.442695, %v2948_v58  ;;  %v2949_v3 = vsub.f32 0.0, %v2933_v16 }
 0x7f0   : > { %3884 = vrcp.f32 %v2969_v5  ;;  %v2966_v39 = vmul.f32 1.442695, %v2951_v51 }
 0x7f1   : > { %3886 = vpow2.f32 %v2964_v63  ;;  %v2962_v20 = vmul.f32 1.442695, %v2949_v3 }
 0x7f2   : > { %3888 = vpow2.f32 %v2960_v22 }
 0x7f3   : > { %3890 = vpow2.f32 %v2966_v39 }
 0x7f4   : > { %3892 = vpow2.f32 %v2962_v20 }
 0x7f7   : > { %v3879_v8 = vpop.eup %3878 }
 0x7f8   : > { %v3881_v7 = vpop.eup %3880  ;;  %v2989_v31 = vsel %vm2986_vm0, %v3879_v8, %v2768_v59 }
 0x7f9   : > { %v3883_v26 = vpop.eup %3882  ;;  %2997 = vst [vmem:[%s4736_s12 + $0x10] sm:$0xff] %v2989_v31  ;;  %v2987_v40 = vsel %vm2986_vm0, %v3881_v7, %v2758_v33 }
 0x7fa   : > { %v3885_v36 = vpop.eup %3884  ;;  %2995 = vst [vmem:[%s4736_s12] sm:$0xff] %v2987_v40  ;;  %v2990_v15 = vsel %vm2986_vm0, %v3883_v26, %v2772_v61 }
 0x7fb   : > { %v3887_v28 = vpop.eup %3886  ;;  %2998 = vst [vmem:[%s4736_s12 + $0x18] sm:$0xff] %v2990_v15  ;;  %v2988_v53 = vsel %vm2986_vm0, %v3885_v36, %v2762_v57 }
 0x7fc   : > { %v3889_v50 = vpop.eup %3888  ;;  %2996 = vst [vmem:[%s4736_s12 + $0x8] sm:$0xff] %v2988_v53  ;;  %v2974_v0 = vadd.f32 1.0, %v3887_v28 }
 0x7fd   : > { %v3891_v62 = vpop.eup %3890  ;;  %v2972_v38 = vadd.f32 1.0, %v3889_v50 }
 0x7fe   : > { %v3893_v43 = vpop.eup %3892  ;;  %3894 = vrcp.f32 %v2974_v0  ;;  %v2975_v32 = vadd.f32 1.0, %v3891_v62 }
 0x7ff   : > { %3896 = vrcp.f32 %v2972_v38  ;;  %v2973_v44 = vadd.f32 1.0, %v3893_v43 }
 0x800   : > { %3898 = vrcp.f32 %v2975_v32 }
 0x801   : > { %3900 = vrcp.f32 %v2973_v44 }
 0x808   : > { %v3895_v37 = vpop.eup %3894 }
 0x809   : > { %v3897_v6 = vpop.eup %3896  ;;  %v2993_v25 = vsel %vm2986_vm0, %v3895_v37, %v2788_v46 }
 0x80a   : > { %v3899_v29 = vpop.eup %3898  ;;  %3001 = vst [vmem:[%s4736_s12 + $0x30] sm:$0xff] %v2993_v25  ;;  %v2991_v24 = vsel %vm2986_vm0, %v3897_v6, %v2778_v48 }
 0x80b   : > { %v3901_v55 = vpop.eup %3900  ;;  %2999 = vst [vmem:[%s4736_s12 + $0x20] sm:$0xff] %v2991_v24  ;;  %v2994_v56 = vsel %vm2986_vm0, %v3899_v29, %v2792_v60 }
 0x80c   : > { %3002 = vst [vmem:[%s4736_s12 + $0x38] sm:$0xff] %v2994_v56  ;;  %v2992_v21 = vsel %vm2986_vm0, %v3901_v55, %v2782_v35 }
 0x80d   : > { %3000 = vst [vmem:[%s4736_s12 + $0x28] sm:$0xff] %v2992_v21 }
 0x80e PF: > { %s19_s27 = sadd.s32 1, %s3940_s27  }
 0x80f   : > { %p16_p3 = scmp.ge.s32.totalorder %s19_s27, 4  }
 0x811   :  { %18 = sbr.rel (!%p16_p3) target bundleno = 1 (0x1), region = 97 }
 0x818   :  { %3025 = vsyncpa [#allocation3], 1 }
 0x819   :  { %3027 = vsyncpa [#allocation3 + $0x1], 1 }

</bundles_post_ra>
